<compile_context>
chip_gen: v7x
topology: tpu7x:2x2x1
jax: 0.10.0
libtpu: 0.0.40
codegen_flags: <defaults>
</compile_context>

<pallas_src>
import functools

import numpy as np
import jax
import jax.numpy as jnp
from jax.experimental import pallas as pl
from jax.experimental.pallas import tpu as pltpu


# ----------------------------------------------------------------------------
# Kernels.  X is a (tile_m, Cin) pixel tile with channels on the lane axis.
# Weights already have the BN scale folded in; biases are f32 (1, Cout) rows.
# ----------------------------------------------------------------------------
def _resblock_proj_kernel(x_ref, w1_ref, b1_ref, w2_ref, wsc_ref, bout_ref,
                          o_ref):
    x = x_ref[...]
    # left: conv1x1(+BN scale folded) -> +bias -> ReLU
    y1 = jnp.dot(x, w1_ref[...], preferred_element_type=jnp.float32)
    y1 = jnp.maximum(y1 + b1_ref[...], 0.0).astype(x.dtype)
    # left: conv1x1(+BN scale folded)
    y2 = jnp.dot(y1, w2_ref[...], preferred_element_type=jnp.float32)
    # shortcut: conv1x1(+BN scale folded)
    ysc = jnp.dot(x, wsc_ref[...], preferred_element_type=jnp.float32)
    # merged bias (b2 + bsc) + final ReLU
    o_ref[...] = jnp.maximum(y2 + ysc + bout_ref[...], 0.0).astype(o_ref.dtype)


def _resblock_id_kernel(x_ref, w1_ref, b1_ref, w2_ref, b2_ref, o_ref):
    x = x_ref[...]
    y1 = jnp.dot(x, w1_ref[...], preferred_element_type=jnp.float32)
    y1 = jnp.maximum(y1 + b1_ref[...], 0.0).astype(x.dtype)
    y2 = jnp.dot(y1, w2_ref[...], preferred_element_type=jnp.float32)
    # identity shortcut: just add x (no matmul, no extra weights in VMEM)
    o_ref[...] = jnp.maximum(
        y2 + b2_ref[...] + x.astype(jnp.float32), 0.0).astype(o_ref.dtype)


# ----------------------------------------------------------------------------
# Wrapper.
# ----------------------------------------------------------------------------
_VMEM_BUDGET = 40 * 1024 * 1024  # working-set budget; fits v7x 64 MiB physical


def _fold_bn(gamma, beta, mean, var, eps=1e-5):
    scale = gamma / jnp.sqrt(var + eps)
    bias = beta - mean * scale
    return scale, bias


def _choose_tile_m(tile_m, M, Cin, Cout, in_bytes, has_proj):
    """Clamp tile_m so the per-step VMEM working set stays under budget."""
    w_elems = Cin * Cout + Cout * Cout + (Cin * Cout if has_proj else 0)
    fixed = 2 * w_elems * in_bytes + 4 * Cout * 4        # 2x-buffered weights + bias rows
    per_row = (2 * Cin * in_bytes                        # x tile (double-buffered)
               + 2 * Cout * 4                            # out tile f32 (double-buffered)
               + 4 * Cout * 4                            # f32 intermediates y1/y2/ysc + slack
               + Cin * 4)                                # f32 staging of x
    avail = max(_VMEM_BUDGET - fixed, per_row * 8)
    fit = max((avail // per_row) // 8 * 8, 8)
    t = max((min(int(tile_m), int(fit)) // 8) * 8, 8)
    # block must not exceed the array extent; if it equals M it is always legal
    return min(t, M) if M >= 8 else M


@functools.partial(jax.jit, static_argnames=("stride", "tile_m", "compute_dtype"))
def residual_block_1x1_v2(x, params, *, stride=1, tile_m=1024,
                          compute_dtype=jnp.bfloat16):
    """x: (N, Cin, H, W) float32 NCHW (PyTorch convention). Returns NCHW f32."""
    N, Cin, H, W = x.shape
    w1 = params["w1"]                      # (Cout, Cin)
    w2 = params["w2"]                      # (Cout, Cout)
    Cout = w1.shape[0]
    has_proj = "wsc" in params
    if not has_proj:
        assert Cin == Cout and stride == 1, (
            "identity shortcut requires inchannel == outchannel and stride == 1")

    # 1x1 conv with stride s is spatial subsampling.
    if stride != 1:
        x = x[:, :, ::stride, ::stride]
    Hs, Ws = x.shape[2], x.shape[3]

    # NCHW -> (M, Cin) pixel matrix (channels on the lane axis), cast to the
    # MXU compute dtype (one fused XLA copy).
    x_mat = jnp.transpose(x, (0, 2, 3, 1)).reshape(-1, Cin).astype(compute_dtype)
    M = x_mat.shape[0]

    # Fold eval-mode BN into the conv weights / biases.
    s1, b1 = _fold_bn(params["bn1_g"], params["bn1_b"], params["bn1_m"], params["bn1_v"])
    s2, b2 = _fold_bn(params["bn2_g"], params["bn2_b"], params["bn2_m"], params["bn2_v"])
    w1_f = (w1.T.astype(jnp.float32) * s1[None, :]).astype(compute_dtype)   # (Cin, Cout)
    w2_f = (w2.T.astype(jnp.float32) * s2[None, :]).astype(compute_dtype)   # (Cout, Cout)
    b1_row = b1.reshape(1, Cout).astype(jnp.float32)

    in_bytes = np.dtype(compute_dtype).itemsize
    tile = _choose_tile_m(tile_m, M, Cin, Cout, in_bytes, has_proj)
    grid = (pl.cdiv(M, tile),)   # ragged last tile handled by Pallas masking

    cparams = pltpu.CompilerParams(
        dimension_semantics=("parallel",),                       # independent M tiles
        vmem_limit_bytes=min(_VMEM_BUDGET + (8 << 20), 64 << 20))

    x_spec = pl.BlockSpec((tile, Cin), lambda i: (i, 0))
    out_spec = pl.BlockSpec((tile, Cout), lambda i: (i, 0))
    full = lambda shape: pl.BlockSpec(shape, lambda i: (0, 0))

    if has_proj:
        ssc, bsc = _fold_bn(params["bnsc_g"], params["bnsc_b"],
                            params["bnsc_m"], params["bnsc_v"])
        wsc_f = (params["wsc"].T.astype(jnp.float32) * ssc[None, :]).astype(compute_dtype)
        bout_row = (b2 + bsc).reshape(1, Cout).astype(jnp.float32)
        out_mat = pl.pallas_call(
            _resblock_proj_kernel,
            out_shape=jax.ShapeDtypeStruct((M, Cout), jnp.float32),
            grid_spec=pltpu.PrefetchScalarGridSpec(
                num_scalar_prefetch=0,
                grid=grid,
                in_specs=[x_spec,
                          full((Cin, Cout)), full((1, Cout)),    # w1, b1
                          full((Cout, Cout)),                    # w2
                          full((Cin, Cout)), full((1, Cout))],   # wsc, b2+bsc
                out_specs=out_spec),
            compiler_params=cparams,
        )(x_mat, w1_f, b1_row, w2_f, wsc_f, bout_row)
    else:
        b2_row = b2.reshape(1, Cout).astype(jnp.float32)
        out_mat = pl.pallas_call(
            _resblock_id_kernel,
            out_shape=jax.ShapeDtypeStruct((M, Cout), jnp.float32),
            grid_spec=pltpu.PrefetchScalarGridSpec(
                num_scalar_prefetch=0,
                grid=grid,
                in_specs=[x_spec,
                          full((Cin, Cout)), full((1, Cout)),    # w1, b1
                          full((Cout, Cout)), full((1, Cout))],  # w2, b2
                out_specs=out_spec),
            compiler_params=cparams,
        )(x_mat, w1_f, b1_row, w2_f, b2_row)

    # (M, Cout) -> NHWC (free reshape) -> NCHW (one copy, required by interface)
    return out_mat.reshape(N, Hs, Ws, Cout).transpose(0, 3, 1, 2)


# ----------------------------------------------------------------------------
# Pure-JAX reference of the PyTorch forward (eval-mode BN) and test params.
# ----------------------------------------------------------------------------
def _reference(x, params, stride=1):
    if stride != 1:
        x = x[:, :, ::stride, ::stride]
    N, Cin, H, W = x.shape
    xm = jnp.transpose(x, (0, 2, 3, 1)).reshape(-1, Cin)

    s1, b1 = _fold_bn(params["bn1_g"], params["bn1_b"], params["bn1_m"], params["bn1_v"])
    s2, b2 = _fold_bn(params["bn2_g"], params["bn2_b"], params["bn2_m"], params["bn2_v"])
    y1 = jnp.maximum(xm @ params["w1"].T * s1 + b1, 0.0)
    y2 = y1 @ params["w2"].T * s2 + b2
    if "wsc" in params:
        ssc, bsc = _fold_bn(params["bnsc_g"], params["bnsc_b"],
                            params["bnsc_m"], params["bnsc_v"])
        ysc = xm @ params["wsc"].T * ssc + bsc
    else:
        ysc = xm
    out = jnp.maximum(y2 + ysc, 0.0)
    Cout = params["w1"].shape[0]
    return out.reshape(N, H, W, Cout).transpose(0, 3, 1, 2)


def make_params(key, inchannel, outchannel, stride=1):
    ks = jax.random.split(key, 12)
    p = {
        "w1": 0.3 * jax.random.normal(ks[0], (outchannel, inchannel), jnp.float32),
        "bn1_g": 1.0 + 0.1 * jax.random.normal(ks[1], (outchannel,), jnp.float32),
        "bn1_b": 0.1 * jax.random.normal(ks[2], (outchannel,), jnp.float32),
        "bn1_m": 0.1 * jax.random.normal(ks[3], (outchannel,), jnp.float32),
        "bn1_v": 0.5 + jax.random.uniform(ks[4], (outchannel,), jnp.float32),
        "w2": 0.3 * jax.random.normal(ks[5], (outchannel, outchannel), jnp.float32),
        "bn2_g": 1.0 + 0.1 * jax.random.normal(ks[6], (outchannel,), jnp.float32),
        "bn2_b": 0.1 * jax.random.normal(ks[7], (outchannel,), jnp.float32),
        "bn2_m": 0.1 * jax.random.normal(ks[8], (outchannel,), jnp.float32),
        "bn2_v": 0.5 + jax.random.uniform(ks[9], (outchannel,), jnp.float32),
    }
    if stride != 1 or inchannel != outchannel:
        ks2 = jax.random.split(ks[10], 5)
        p.update({
            "wsc": 0.3 * jax.random.normal(ks2[0], (outchannel, inchannel), jnp.float32),
            "bnsc_g": 1.0 + 0.1 * jax.random.normal(ks2[1], (outchannel,), jnp.float32),
            "bnsc_b": 0.1 * jax.random.normal(ks2[2], (outchannel,), jnp.float32),
            "bnsc_m": 0.1 * jax.random.normal(ks2[3], (outchannel,), jnp.float32),
            "bnsc_v": 0.5 + jax.random.uniform(ks2[4], (outchannel,), jnp.float32),
        })
    return p


if __name__ == "__main__":
    key = jax.random.PRNGKey(0)
    k_x1, k_p1, k_x2, k_p2 = jax.random.split(key, 4)

    # Config 1: projection shortcut (inchannel != outchannel).
    N, Cin, Cout, H, W = 2, 4, 8, 16, 16
    x1 = jax.random.normal(k_x1, (N, Cin, H, W), jnp.float32)
    p1 = make_params(k_p1, Cin, Cout, stride=1)
    ref1 = _reference(x1, p1, stride=1)

    # f32 path: matches the original module numerics tightly.
    out_f32 = jax.block_until_ready(
        residual_block_1x1_v2(x1, p1, stride=1, compute_dtype=jnp.float32))
    assert out_f32.shape == ref1.shape, (out_f32.shape, ref1.shape)
    assert jnp.allclose(out_f32, ref1, atol=1e-5, rtol=1e-5), "f32 proj mismatch"

    # bf16 MXU path (default): bf16-appropriate tolerance vs the f32 reference.
    out_bf16 = jax.block_until_ready(residual_block_1x1_v2(x1, p1, stride=1))
    assert jnp.allclose(out_bf16, ref1, atol=5e-2, rtol=5e-2), "bf16 proj mismatch"

    # Strided projection shortcut (stride=2).
    out_s2 = jax.block_until_ready(
        residual_block_1x1_v2(x1, p1, stride=2, compute_dtype=jnp.float32))
    ref_s2 = _reference(x1, p1, stride=2)
    assert out_s2.shape == ref_s2.shape
    assert jnp.allclose(out_s2, ref_s2, atol=1e-5, rtol=1e-5), "stride-2 mismatch"

    # Config 2: identity shortcut (inchannel == outchannel, stride=1) — uses
    # the specialized kernel with no shortcut matmul.
    C = 8
    x2 = jax.random.normal(k_x2, (N, C, H, W), jnp.float32)
    p2 = make_params(k_p2, C, C, stride=1)
    ref2 = _reference(x2, p2, stride=1)
    out2_f32 = jax.block_until_ready(
        residual_block_1x1_v2(x2, p2, stride=1, compute_dtype=jnp.float32))
    assert jnp.allclose(out2_f32, ref2, atol=1e-5, rtol=1e-5), "f32 id mismatch"
    out2_bf16 = jax.block_until_ready(residual_block_1x1_v2(x2, p2, stride=1))
    assert jnp.allclose(out2_bf16, ref2, atol=5e-2, rtol=5e-2), "bf16 id mismatch"

    print("KERNEL_OK")
</pallas_src>

<mosaic_0001>
module attributes {stable_mosaic.version = 11 : i64} {
  func.func @_resblock_proj_kernel(%arg0: i32, %arg1: memref<512x4xf32, #tpu.memory_space<vmem>>, %arg2: memref<4x8xf32, #tpu.memory_space<vmem>>, %arg3: memref<1x8xf32, #tpu.memory_space<vmem>>, %arg4: memref<8x8xf32, #tpu.memory_space<vmem>>, %arg5: memref<4x8xf32, #tpu.memory_space<vmem>>, %arg6: memref<1x8xf32, #tpu.memory_space<vmem>>, %arg7: memref<512x8xf32, #tpu.memory_space<vmem>>) attributes {dimension_semantics = [#tpu.dimension_semantics<parallel>], iteration_bounds = array<i64: 1>, scalar_prefetch = 0 : i64, scratch_operands = 0 : i64, tpu.core_type = #tpu.core_type<tc>, window_params = [{transform_indices = @transform_0, window_bounds = array<i64: 512, 4>}, {pipeline_mode = #tpu.pipeline_mode<synchronous>, transform_indices = @transform_1, window_bounds = array<i64: 4, 8>}, {pipeline_mode = #tpu.pipeline_mode<synchronous>, transform_indices = @transform_2, window_bounds = array<i64: 1, 8>}, {pipeline_mode = #tpu.pipeline_mode<synchronous>, transform_indices = @transform_3, window_bounds = array<i64: 8, 8>}, {pipeline_mode = #tpu.pipeline_mode<synchronous>, transform_indices = @transform_4, window_bounds = array<i64: 4, 8>}, {pipeline_mode = #tpu.pipeline_mode<synchronous>, transform_indices = @transform_5, window_bounds = array<i64: 1, 8>}, {transform_indices = @transform_6, window_bounds = array<i64: 512, 8>}]} {
    %c0 = arith.constant 0 : index
    %c0_0 = arith.constant 0 : index
    %0 = vector.load %arg1[%c0, %c0_0] : memref<512x4xf32, #tpu.memory_space<vmem>>, vector<512x4xf32>
    %c0_1 = arith.constant 0 : index
    %c0_2 = arith.constant 0 : index
    %1 = vector.load %arg2[%c0_1, %c0_2] : memref<4x8xf32, #tpu.memory_space<vmem>>, vector<4x8xf32>
    %cst = arith.constant dense<0.000000e+00> : vector<512x8xf32>
    %2 = tpu.matmul %0, %1, %cst {dimension_numbers = #tpu.dot_dimension_numbers<[1], [0], [0], [1], [0, 0, 1, 1], [], []>} : vector<512x4xf32>, vector<4x8xf32>, vector<512x8xf32> -> vector<512x8xf32>
    %c0_3 = arith.constant 0 : index
    %c0_4 = arith.constant 0 : index
    %3 = vector.load %arg3[%c0_3, %c0_4] : memref<1x8xf32, #tpu.memory_space<vmem>>, vector<1x8xf32>
    %4 = vector.broadcast %3 : vector<1x8xf32> to vector<512x8xf32>
    %5 = arith.addf %2, %4 : vector<512x8xf32>
    %cst_5 = arith.constant 0.000000e+00 : f32
    %6 = vector.broadcast %cst_5 : f32 to vector<512x8xf32>
    %7 = arith.maximumf %5, %6 : vector<512x8xf32>
    %c0_6 = arith.constant 0 : index
    %c0_7 = arith.constant 0 : index
    %8 = vector.load %arg4[%c0_6, %c0_7] : memref<8x8xf32, #tpu.memory_space<vmem>>, vector<8x8xf32>
    %cst_8 = arith.constant dense<0.000000e+00> : vector<512x8xf32>
    %9 = tpu.matmul %7, %8, %cst_8 {dimension_numbers = #tpu.dot_dimension_numbers<[1], [0], [0], [1], [0, 0, 1, 1], [], []>} : vector<512x8xf32>, vector<8x8xf32>, vector<512x8xf32> -> vector<512x8xf32>
    %c0_9 = arith.constant 0 : index
    %c0_10 = arith.constant 0 : index
    %10 = vector.load %arg5[%c0_9, %c0_10] : memref<4x8xf32, #tpu.memory_space<vmem>>, vector<4x8xf32>
    %cst_11 = arith.constant dense<0.000000e+00> : vector<512x8xf32>
    %11 = tpu.matmul %0, %10, %cst_11 {dimension_numbers = #tpu.dot_dimension_numbers<[1], [0], [0], [1], [0, 0, 1, 1], [], []>} : vector<512x4xf32>, vector<4x8xf32>, vector<512x8xf32> -> vector<512x8xf32>
    %12 = arith.addf %9, %11 : vector<512x8xf32>
    %c0_12 = arith.constant 0 : index
    %c0_13 = arith.constant 0 : index
    %13 = vector.load %arg6[%c0_12, %c0_13] : memref<1x8xf32, #tpu.memory_space<vmem>>, vector<1x8xf32>
    %14 = vector.broadcast %13 : vector<1x8xf32> to vector<512x8xf32>
    %15 = arith.addf %12, %14 : vector<512x8xf32>
    %cst_14 = arith.constant 0.000000e+00 : f32
    %16 = vector.broadcast %cst_14 : f32 to vector<512x8xf32>
    %17 = arith.maximumf %15, %16 : vector<512x8xf32>
    %c0_15 = arith.constant 0 : index
    %c0_16 = arith.constant 0 : index
    %18 = vector.load %arg7[%c0_15, %c0_16] : memref<512x8xf32, #tpu.memory_space<vmem>>, vector<512x8xf32>
    tpu.vector_store %arg7[%c0_15, %c0_16], %17 {strides = array<i32>} : memref<512x8xf32, #tpu.memory_space<vmem>>, vector<512x8xf32>,
    return
  }
  func.func @transform_0(%arg0: i32) -> (i32, i32) {
    %c0_i32 = arith.constant 0 : i32
    %c0_i32_0 = arith.constant 0 : i32
    return %arg0, %c0_i32 : i32, i32
  }
  func.func @transform_1(%arg0: i32) -> (i32, i32) {
    %c0_i32 = arith.constant 0 : i32
    %c0_i32_0 = arith.constant 0 : i32
    %c0_i32_1 = arith.constant 0 : i32
    return %c0_i32, %c0_i32_0 : i32, i32
  }
  func.func @transform_2(%arg0: i32) -> (i32, i32) {
    %c0_i32 = arith.constant 0 : i32
    %c0_i32_0 = arith.constant 0 : i32
    %c0_i32_1 = arith.constant 0 : i32
    return %c0_i32, %c0_i32_0 : i32, i32
  }
  func.func @transform_3(%arg0: i32) -> (i32, i32) {
    %c0_i32 = arith.constant 0 : i32
    %c0_i32_0 = arith.constant 0 : i32
    %c0_i32_1 = arith.constant 0 : i32
    return %c0_i32, %c0_i32_0 : i32, i32
  }
  func.func @transform_4(%arg0: i32) -> (i32, i32) {
    %c0_i32 = arith.constant 0 : i32
    %c0_i32_0 = arith.constant 0 : i32
    %c0_i32_1 = arith.constant 0 : i32
    return %c0_i32, %c0_i32_0 : i32, i32
  }
  func.func @transform_5(%arg0: i32) -> (i32, i32) {
    %c0_i32 = arith.constant 0 : i32
    %c0_i32_0 = arith.constant 0 : i32
    %c0_i32_1 = arith.constant 0 : i32
    return %c0_i32, %c0_i32_0 : i32, i32
  }
  func.func @transform_6(%arg0: i32) -> (i32, i32) {
    %c0_i32 = arith.constant 0 : i32
    %c0_i32_0 = arith.constant 0 : i32
    return %arg0, %c0_i32 : i32, i32
  }
}

</mosaic_0001>

<bundles_post_ra>
// kernel: residual_block_1x1_v2.1
= control target key start
LH: loop header
LB: loop body
LE: loop exit
PB: predicated region body
PF: predicated region fallthrough
CT: control target
= control target key end

     0   :  { %vm288_vm0 = vcmask 1043456   ;;  %vm95_vm1 = vcmask 31744   ;;  %vm1131_vm2 = vcmask 64512   ;;  %s3751_s1 = inlined_call_operand.vmem [shape: f32[4,8], index: 1, kind: input, shape index: {}]   ;;  %s3752_s0 = inlined_call_operand.vmem [shape: f32[512,4], index: 0, kind: input, shape index: {}]   ;;  %s3753_s4 = inlined_call_operand.vmem [shape: f32[4,8], index: 4, kind: input, shape index: {}]   ;;  %s3754_s3 = inlined_call_operand.vmem [shape: f32[8,8], index: 3, kind: input, shape index: {}]   ;;  %s3755_s2 = inlined_call_operand.vmem [shape: f32[1,8], index: 2, kind: input, shape index: {}]   ;;  %s3756_s5 = inlined_call_operand.vmem [shape: f32[1,8], index: 5, kind: input, shape index: {}]   ;;  %s3757_s6 = inlined_call_operand.vmem [shape: f32[512,8], index: 6, kind: output, shape index: {}]  }
   0x1   :  { %v87_v0 = vld [vmem:[%s3751_s1] sm:$0xf]  ;;  %v2709_v2 = vld [vmem:[%s3752_s0 + $0x8] sm:$0xff]  ;;  %v2717_v3 = vld [vmem:[%s3752_s0 + $0x10] sm:$0xff] }
   0x2   :  { %v2704_v1 = vld [vmem:[%s3752_s0] sm:$0xff]  ;;  %2303 = vmatprep.subr.msk.mxu0 %vm288_vm0, %v87_v0  ;;  %v2727_v4 = vld [vmem:[%s3752_s0 + $0x18] sm:$0xff]  ;;  %v2741_v6 = vld [vmem:[%s3752_s0 + $0x28] sm:$0xff] }
   0x3   :  { %2305 = vmatprep.mubr.msk.f32.mxu0 %vm95_vm1, %v2704_v1  ;;  %2304 = vmatpush3.msk.msra.mxu0 %vm288_vm0, %v87_v0  ;;  %v2732_v5 = vld [vmem:[%s3752_s0 + $0x20] sm:$0xff]  ;;  %v2746_v7 = vld [vmem:[%s3752_s0 + $0x30] sm:$0xff]  ;;  %v2760_v9 = vld [vmem:[%s3752_s0 + $0x38] sm:$0xff] }
   0x4   :  { %2306 = vmatmul.mubr.msk.f32.vlgmr.msra.gmra.mrb[0].mxu0 %vm95_vm1, %v2709_v2  ;;  %v2753_v8 = vld [vmem:[%s3752_s0 + $0x100] sm:$0xff]  ;;  %v2776_v11 = vld [vmem:[%s3752_s0 + $0x48] sm:$0xff]  ;;  %v2781_v12 = vld [vmem:[%s3752_s0 + $0x50] sm:$0xff] }
   0x5   :  { %2308 = vmatprep.mubr.msk.f32.mxu0 %vm95_vm1, %v2717_v3  ;;  %2451 = vmatprep.mubr.msk.f32.mxu1 %vm95_vm1, %v2753_v8  ;;  %v2767_v10 = vld [vmem:[%s3752_s0 + $0x40] sm:$0xff]  ;;  %v2790_v13 = vld [vmem:[%s3752_s0 + $0x58] sm:$0xff]  ;;  %v2813_v17 = vld [vmem:[%s3752_s0 + $0x68] sm:$0xff] }
   0x6   :  { %v2795_v14 = vld [vmem:[%s3752_s0 + $0x60] sm:$0xff]  ;;  %v2818_v18 = vld [vmem:[%s3752_s0 + $0x108] sm:$0xff]  ;;  %v2824_v19 = vld [vmem:[%s3752_s0 + $0x70] sm:$0xff] }
   0x7   :  { %v742_v15 = vld [vmem:[%s3753_s4] sm:$0xf]  ;;  %v2829_v20 = vld [vmem:[%s3752_s0 + $0x110] sm:$0xff]  ;;  %v2842_v21 = vld [vmem:[%s3752_s0 + $0x78] sm:$0xff] }
   0x8   :  { %2309 = vmatmul.mubr.msk.f32.gmra.mrb[2].mxu0 %vm95_vm1, %v2727_v4  ;;  %2401 = vmatprep.subr.msk.mxu0 %vm288_vm0, %v742_v15  ;;  %v741_v16 = vld [vmem:[%s3754_s3] sm:$0xff]  ;;  %v2847_v22 = vld [vmem:[%s3752_s0 + $0x118] sm:$0xff]  ;;  %v2870_v25 = vld [vmem:[%s3752_s0 + $0x88] sm:$0xff] }
   0x9   :  { %2311 = vmatprep.mubr.msk.f32.mxu0 %vm95_vm1, %v2732_v5  ;;  %2597 = vmatprep.subr.msk.mxu1 %vm288_vm0, %v742_v15  ;;  %v2852_v23 = vld [vmem:[%s3752_s0 + $0x80] sm:$0xff]  ;;  %v2875_v26 = vld [vmem:[%s3752_s0 + $0x128] sm:$0xff]  ;;  %v2880_v27 = vld [vmem:[%s3752_s0 + $0x90] sm:$0xff] }
   0xa   :  { %2598 = vmatpush3.msk.msra.mxu1 %vm288_vm0, %v742_v15  ;;  %2402 = vmatpush3.msk.msra.mxu0 %vm288_vm0, %v742_v15  ;;  %v2857_v24 = vld [vmem:[%s3752_s0 + $0x120] sm:$0xff]  ;;  %v2885_v28 = vld [vmem:[%s3752_s0 + $0x130] sm:$0xff]  ;;  %v2898_v29 = vld [vmem:[%s3752_s0 + $0x98] sm:$0xff] }
   0xb   :  { %2499 = vmatprep.subr.mxu1 %v741_v16  ;;  %2452 = vmatmul.mubr.msk.f32.vlgmr.msra.gmra.mrb[0].mxu1 %vm95_vm1, %v2818_v18  ;;  %v2903_v30 = vld [vmem:[%s3752_s0 + $0x138] sm:$0xff]  ;;  %v2908_v31 = vld [vmem:[%s3752_s0 + $0xa0] sm:$0xff]  ;;  %v2926_v33 = vld [vmem:[%s3752_s0 + $0xa8] sm:$0xff] }
   0xc   :  { %2312 = vmatmul.mubr.msk.f32.gmra.mrb[4].mxu0 %vm95_vm1, %v2741_v6  ;;  %2500 = vmatpush3.msra.mxu1 %v741_v16  ;;  %v2913_v32 = vld [vmem:[%s3752_s0 + $0x140] sm:$0xff]  ;;  %v2931_v34 = vld [vmem:[%s3752_s0 + $0x148] sm:$0xff]  ;;  %v2936_v35 = vld [vmem:[%s3752_s0 + $0xb0] sm:$0xff] }
   0xd   :  { %2314 = vmatprep.mubr.msk.f32.mxu0 %vm95_vm1, %v2746_v7  ;;  %2454 = vmatprep.mubr.msk.f32.mxu1 %vm95_vm1, %v2829_v20  ;;  %v2941_v36 = vld [vmem:[%s3752_s0 + $0x150] sm:$0xff]  ;;  %v2954_v37 = vld [vmem:[%s3752_s0 + $0xb8] sm:$0xff]  ;;  %v2964_v39 = vld [vmem:[%s3752_s0 + $0xc0] sm:$0xff] }
   0xe   :  { %v2959_v38 = vld [vmem:[%s3752_s0 + $0x158] sm:$0xff]  ;;  %v2969_v40 = vld [vmem:[%s3752_s0 + $0x160] sm:$0xff]  ;;  %v2982_v41 = vld [vmem:[%s3752_s0 + $0xc8] sm:$0xff] }
   0xf   :  { %2455 = vmatmul.mubr.msk.f32.gmra.mrb[2].mxu1 %vm95_vm1, %v2847_v22  ;;  %v2987_v42 = vld [vmem:[%s3752_s0 + $0x168] sm:$0xff]  ;;  %v2992_v43 = vld [vmem:[%s3752_s0 + $0xd0] sm:$0xff]  ;;  %v3010_v45 = vld [vmem:[%s3752_s0 + $0xd8] sm:$0xff] }
  0x10   :  { %2315 = vmatmul.mubr.msk.f32.gmra.mrb[6].mxu0 %vm95_vm1, %v2760_v9  ;;  %2457 = vmatprep.mubr.msk.f32.mxu1 %vm95_vm1, %v2857_v24  ;;  %v2997_v44 = vld [vmem:[%s3752_s0 + $0x170] sm:$0xff]  ;;  %v70_v46 = vld [vmem:[%s3752_s0 + $0x178] sm:$0xff]  ;;  %v3018_v47 = vld [vmem:[%s3752_s0 + $0xe0] sm:$0xff] }
  0x11   :  { %2317 = vmatprep.mubr.msk.f32.mxu0 %vm95_vm1, %v2767_v10  ;;  %v71_v48 = vld [vmem:[%s3752_s0 + $0x180] sm:$0xff]  ;;  %v3032_v49 = vld [vmem:[%s3752_s0 + $0xe8] sm:$0xff]  ;;  %v3040_v51 = vld [vmem:[%s3752_s0 + $0xf0] sm:$0xff] }
  0x12   :  { %v72_v50 = vld [vmem:[%s3752_s0 + $0x188] sm:$0xff]  ;;  %v73_v52 = vld [vmem:[%s3752_s0 + $0x190] sm:$0xff]  ;;  %v3054_v53 = vld [vmem:[%s3752_s0 + $0xf8] sm:$0xff] }
  0x13   :  { %2458 = vmatmul.mubr.msk.f32.gmra.mrb[4].mxu1 %vm95_vm1, %v2875_v26  ;;  %v74_v54 = vld [vmem:[%s3752_s0 + $0x198] sm:$0xff]  ;;  %v75_v55 = vld [vmem:[%s3752_s0 + $0x1a0] sm:$0xff]  ;;  %v76_v56 = vld [vmem:[%s3752_s0 + $0x1a8] sm:$0xff] }
  0x14   :  { %2318 = vmatmul.mubr.msk.f32.gmra.mrb[8].mxu0 %vm95_vm1, %v2776_v11  ;;  %2460 = vmatprep.mubr.msk.f32.mxu1 %vm95_vm1, %v2885_v28  ;;  %v77_v57 = vld [vmem:[%s3752_s0 + $0x1b0] sm:$0xff]  ;;  %v78_v58 = vld [vmem:[%s3752_s0 + $0x1b8] sm:$0xff]  ;;  %v79_v59 = vld [vmem:[%s3752_s0 + $0x1c0] sm:$0xff] }
  0x15   :  { %2320 = vmatprep.mubr.msk.f32.mxu0 %vm95_vm1, %v2781_v12  ;;  %v80_v60 = vld [vmem:[%s3752_s0 + $0x1c8] sm:$0xff]  ;;  %v81_v61 = vld [vmem:[%s3752_s0 + $0x1d0] sm:$0xff]  ;;  %v82_v62 = vld [vmem:[%s3752_s0 + $0x1d8] sm:$0xff] }
  0x16   :  { %v83_v63 = vld [vmem:[%s3752_s0 + $0x1e0] sm:$0xff]  ;;  %v84_v0 = vld [vmem:[%s3752_s0 + $0x1e8] sm:$0xff]  ;;  %v86_v15 = vld [vmem:[%s3752_s0 + $0x1f8] sm:$0xff] }
  0x17   :  { %2461 = vmatmul.mubr.msk.f32.gmra.mrb[6].mxu1 %vm95_vm1, %v2903_v30 }
  0x18   :  { %2321 = vmatmul.mubr.msk.f32.gmra.mrb[10].mxu0 %vm95_vm1, %v2790_v13  ;;  %2463 = vmatprep.mubr.msk.f32.mxu1 %vm95_vm1, %v2913_v32 }
  0x19   :  { %2323 = vmatprep.mubr.msk.f32.mxu0 %vm95_vm1, %v2795_v14 }
  0x1b   :  { %2464 = vmatmul.mubr.msk.f32.gmra.mrb[8].mxu1 %vm95_vm1, %v2931_v34 }
  0x1c   :  { %2324 = vmatmul.mubr.msk.f32.gmra.mrb[12].mxu0 %vm95_vm1, %v2813_v17  ;;  %2466 = vmatprep.mubr.msk.f32.mxu1 %vm95_vm1, %v2941_v36 }
  0x1d   :  { %2326 = vmatprep.mubr.msk.f32.mxu0 %vm95_vm1, %v2824_v19 }
  0x1f   :  { %2467 = vmatmul.mubr.msk.f32.gmra.mrb[10].mxu1 %vm95_vm1, %v2959_v38 }
  0x20   :  { %2327 = vmatmul.mubr.msk.f32.gmra.mrb[14].mxu0 %vm95_vm1, %v2842_v21  ;;  %2469 = vmatprep.mubr.msk.f32.mxu1 %vm95_vm1, %v2969_v40 }
  0x21   :  { %2329 = vmatprep.mubr.msk.f32.mxu0 %vm95_vm1, %v2852_v23 }
  0x23   :  { %2470 = vmatmul.mubr.msk.f32.gmra.mrb[12].mxu1 %vm95_vm1, %v2987_v42 }
  0x24   :  { %2330 = vmatmul.mubr.msk.f32.gmra.mrb[16].mxu0 %vm95_vm1, %v2870_v25  ;;  %2472 = vmatprep.mubr.msk.f32.mxu1 %vm95_vm1, %v2997_v44 }
  0x25   :  { %2332 = vmatprep.mubr.msk.f32.mxu0 %vm95_vm1, %v2880_v27 }
  0x27   :  { %2473 = vmatmul.mubr.msk.f32.gmra.mrb[14].mxu1 %vm95_vm1, %v70_v46 }
  0x28   :  { %2333 = vmatmul.mubr.msk.f32.gmra.mrb[18].mxu0 %vm95_vm1, %v2898_v29  ;;  %2475 = vmatprep.mubr.msk.f32.mxu1 %vm95_vm1, %v71_v48 }
  0x29   :  { %2335 = vmatprep.mubr.msk.f32.mxu0 %vm95_vm1, %v2908_v31 }
  0x2b   :  { %2476 = vmatmul.mubr.msk.f32.gmra.mrb[16].mxu1 %vm95_vm1, %v72_v50 }
  0x2c   :  { %2336 = vmatmul.mubr.msk.f32.gmra.mrb[20].mxu0 %vm95_vm1, %v2926_v33  ;;  %2478 = vmatprep.mubr.msk.f32.mxu1 %vm95_vm1, %v73_v52 }
  0x2d   :  { %2338 = vmatprep.mubr.msk.f32.mxu0 %vm95_vm1, %v2936_v35 }
  0x2f   :  { %2479 = vmatmul.mubr.msk.f32.gmra.mrb[18].mxu1 %vm95_vm1, %v74_v54 }
  0x30   :  { %2339 = vmatmul.mubr.msk.f32.gmra.mrb[22].mxu0 %vm95_vm1, %v2954_v37  ;;  %2481 = vmatprep.mubr.msk.f32.mxu1 %vm95_vm1, %v75_v55 }
  0x31   :  { %2341 = vmatprep.mubr.msk.f32.mxu0 %vm95_vm1, %v2964_v39 }
  0x33   :  { %2482 = vmatmul.mubr.msk.f32.gmra.mrb[20].mxu1 %vm95_vm1, %v76_v56 }
  0x34   :  { %2342 = vmatmul.mubr.msk.f32.gmra.mrb[24].mxu0 %vm95_vm1, %v2982_v41  ;;  %2484 = vmatprep.mubr.msk.f32.mxu1 %vm95_vm1, %v77_v57 }
  0x35   :  { %2344 = vmatprep.mubr.msk.f32.mxu0 %vm95_vm1, %v2992_v43 }
  0x37   :  { %2485 = vmatmul.mubr.msk.f32.gmra.mrb[22].mxu1 %vm95_vm1, %v78_v58 }
  0x38   :  { %2345 = vmatmul.mubr.msk.f32.gmra.mrb[26].mxu0 %vm95_vm1, %v3010_v45  ;;  %2487 = vmatprep.mubr.msk.f32.mxu1 %vm95_vm1, %v79_v59 }
  0x39   :  { %2347 = vmatprep.mubr.msk.f32.mxu0 %vm95_vm1, %v3018_v47 }
  0x3b   :  { %2488 = vmatmul.mubr.msk.f32.gmra.mrb[24].mxu1 %vm95_vm1, %v80_v60 }
  0x3c   :  { %2348 = vmatmul.mubr.msk.f32.gmra.mrb[28].mxu0 %vm95_vm1, %v3032_v49  ;;  %2490 = vmatprep.mubr.msk.f32.mxu1 %vm95_vm1, %v81_v61 }
  0x3d   :  { %2350 = vmatprep.mubr.msk.f32.mxu0 %vm95_vm1, %v3040_v51 }
  0x3f   :  { %2491 = vmatmul.mubr.msk.f32.gmra.mrb[26].mxu1 %vm95_vm1, %v82_v62 }
  0x40   :  { %2351 = vmatmul.mubr.msk.f32.gmra.mrb[30].mxu0 %vm95_vm1, %v3054_v53  ;;  %2493 = vmatprep.mubr.msk.f32.mxu1 %vm95_vm1, %v83_v63 }
  0x41   :  { %2353 = vmatprep.mubr.msk.f32.mxu0 %vm95_vm1, %v2753_v8  ;;  %v85_v8 = vld [vmem:[%s3752_s0 + $0x1f0] sm:$0xff] }
  0x43   :  { %2494 = vmatmul.mubr.msk.f32.gmra.mrb[28].mxu1 %vm95_vm1, %v84_v0 }
  0x44   :  { %2354 = vmatmul.mubr.msk.f32.gmra.mrb[32].mxu0 %vm95_vm1, %v2818_v18  ;;  %2496 = vmatprep.mubr.msk.f32.mxu1 %vm95_vm1, %v85_v8 }
  0x45   :  { %2356 = vmatprep.mubr.msk.f32.mxu0 %vm95_vm1, %v2829_v20 }
  0x47   :  { %2497 = vmatmul.mubr.msk.f32.gmra.mrb[30].mxu1 %vm95_vm1, %v86_v15 }
  0x48   :  { %2357 = vmatmul.mubr.msk.f32.gmra.mrb[34].mxu0 %vm95_vm1, %v2847_v22 }
  0x49   :  { %2359 = vmatprep.mubr.msk.f32.mxu0 %vm95_vm1, %v2857_v24 }
  0x4c   :  { %2360 = vmatmul.mubr.msk.f32.gmra.mrb[36].mxu0 %vm95_vm1, %v2875_v26 }
  0x4d   :  { %2362 = vmatprep.mubr.msk.f32.mxu0 %vm95_vm1, %v2885_v28 }
  0x50   :  { %2363 = vmatmul.mubr.msk.f32.gmra.mrb[38].mxu0 %vm95_vm1, %v2903_v30 }
  0x51   :  { %2365 = vmatprep.mubr.msk.f32.mxu0 %vm95_vm1, %v2913_v32 }
  0x54   :  { %2366 = vmatmul.mubr.msk.f32.gmra.mrb[40].mxu0 %vm95_vm1, %v2931_v34 }
  0x55   :  { %2368 = vmatprep.mubr.msk.f32.mxu0 %vm95_vm1, %v2941_v36 }
  0x58   :  { %2369 = vmatmul.mubr.msk.f32.gmra.mrb[42].mxu0 %vm95_vm1, %v2959_v38 }
  0x59   :  { %2371 = vmatprep.mubr.msk.f32.mxu0 %vm95_vm1, %v2969_v40 }
  0x5c   :  { %2372 = vmatmul.mubr.msk.f32.gmra.mrb[44].mxu0 %vm95_vm1, %v2987_v42 }
  0x5d   :  { %2374 = vmatprep.mubr.msk.f32.mxu0 %vm95_vm1, %v2997_v44 }
  0x60   :  { %2375 = vmatmul.mubr.msk.f32.gmra.mrb[46].mxu0 %vm95_vm1, %v70_v46 }
  0x61   :  { %2377 = vmatprep.mubr.msk.f32.mxu0 %vm95_vm1, %v71_v48 }
  0x64   :  { %2378 = vmatmul.mubr.msk.f32.gmra.mrb[48].mxu0 %vm95_vm1, %v72_v50 }
  0x65   :  { %2380 = vmatprep.mubr.msk.f32.mxu0 %vm95_vm1, %v73_v52 }
  0x68   :  { %2381 = vmatmul.mubr.msk.f32.gmra.mrb[50].mxu0 %vm95_vm1, %v74_v54 }
  0x69   :  { %2383 = vmatprep.mubr.msk.f32.mxu0 %vm95_vm1, %v75_v55 }
  0x6c   :  { %2384 = vmatmul.mubr.msk.f32.gmra.mrb[52].mxu0 %vm95_vm1, %v76_v56 }
  0x6d   :  { %2386 = vmatprep.mubr.msk.f32.mxu0 %vm95_vm1, %v77_v57 }
  0x70   :  { %2387 = vmatmul.mubr.msk.f32.gmra.mrb[54].mxu0 %vm95_vm1, %v78_v58 }
  0x71   :  { %2389 = vmatprep.mubr.msk.f32.mxu0 %vm95_vm1, %v79_v59 }
  0x74   :  { %2390 = vmatmul.mubr.msk.f32.gmra.mrb[56].mxu0 %vm95_vm1, %v80_v60 }
  0x75   :  { %2392 = vmatprep.mubr.msk.f32.mxu0 %vm95_vm1, %v81_v61 }
  0x78   :  { %2393 = vmatmul.mubr.msk.f32.gmra.mrb[58].mxu0 %vm95_vm1, %v82_v62 }
  0x79   :  { %2395 = vmatprep.mubr.msk.f32.mxu0 %vm95_vm1, %v83_v63 }
  0x7c   :  { %2396 = vmatmul.mubr.msk.f32.gmra.mrb[60].mxu0 %vm95_vm1, %v84_v0 }
  0x7d   :  { %2398 = vmatprep.mubr.msk.f32.mxu0 %vm95_vm1, %v85_v8 }
  0x80   :  { %2399 = vmatmul.mubr.msk.f32.gmra.mrb[62].mxu0 %vm95_vm1, %v86_v15 }
  0x81   :  { %2403 = vmatprep.mubr.msk.f32.mxu0 %vm95_vm1, %v2704_v1  ;;  %v3224_v1 = vld [vmem:[%s3755_s2] ss:$0 sm:$0xff] }
  0x84   :  { %2404 = vmatmul.mubr.msk.f32.vlgmr.msra.gmra.mrb[64].mxu0 %vm95_vm1, %v2709_v2 }
  0x85   :  { %2406 = vmatprep.mubr.msk.f32.mxu0 %vm95_vm1, %v2717_v3 }
  0x88   :  { %2407 = vmatmul.mubr.msk.f32.gmra.mrb[66].mxu0 %vm95_vm1, %v2727_v4 }
  0x89   :  { %2409 = vmatprep.mubr.msk.f32.mxu0 %vm95_vm1, %v2732_v5 }
  0x8c   :  { %2410 = vmatmul.mubr.msk.f32.gmra.mrb[68].mxu0 %vm95_vm1, %v2741_v6 }
  0x8d   :  { %2412 = vmatprep.mubr.msk.f32.mxu0 %vm95_vm1, %v2746_v7 }
  0x90   :  { %2413 = vmatmul.mubr.msk.f32.gmra.mrb[70].mxu0 %vm95_vm1, %v2760_v9 }
  0x91   :  { %2415 = vmatprep.mubr.msk.f32.mxu0 %vm95_vm1, %v2767_v10 }
  0x94   :  { %2416 = vmatmul.mubr.msk.f32.gmra.mrb[72].mxu0 %vm95_vm1, %v2776_v11 }
  0x95   :  { %2418 = vmatprep.mubr.msk.f32.mxu0 %vm95_vm1, %v2781_v12 }
  0x98   :  { %2419 = vmatmul.mubr.msk.f32.gmra.mrb[74].mxu0 %vm95_vm1, %v2790_v13 }
  0x99   :  { %2421 = vmatprep.mubr.msk.f32.mxu0 %vm95_vm1, %v2795_v14 }
  0x9c   :  { %2422 = vmatmul.mubr.msk.f32.gmra.mrb[76].mxu0 %vm95_vm1, %v2813_v17 }
  0x9d   :  { %2424 = vmatprep.mubr.msk.f32.mxu0 %vm95_vm1, %v2824_v19 }
  0xa0   :  { %2425 = vmatmul.mubr.msk.f32.gmra.mrb[78].mxu0 %vm95_vm1, %v2842_v21 }
  0xa1   :  { %2427 = vmatprep.mubr.msk.f32.mxu0 %vm95_vm1, %v2852_v23 }
  0xa4   :  { %2428 = vmatmul.mubr.msk.f32.gmra.mrb[80].mxu0 %vm95_vm1, %v2870_v25 }
  0xa5   :  { %2430 = vmatprep.mubr.msk.f32.mxu0 %vm95_vm1, %v2880_v27 }
  0xa8   :  { %2431 = vmatmul.mubr.msk.f32.gmra.mrb[82].mxu0 %vm95_vm1, %v2898_v29 }
  0xa9   :  { %2433 = vmatprep.mubr.msk.f32.mxu0 %vm95_vm1, %v2908_v31 }
  0xac   :  { %2434 = vmatmul.mubr.msk.f32.gmra.mrb[84].mxu0 %vm95_vm1, %v2926_v33 }
  0xad   :  { %2436 = vmatprep.mubr.msk.f32.mxu0 %vm95_vm1, %v2936_v35 }
  0xb0   :  { %2437 = vmatmul.mubr.msk.f32.gmra.mrb[86].mxu0 %vm95_vm1, %v2954_v37 }
  0xb1   :  { %2439 = vmatprep.mubr.msk.f32.mxu0 %vm95_vm1, %v2964_v39 }
  0xb4   :  { %2440 = vmatmul.mubr.msk.f32.gmra.mrb[88].mxu0 %vm95_vm1, %v2982_v41 }
  0xb5   :  { %2442 = vmatprep.mubr.msk.f32.mxu0 %vm95_vm1, %v2992_v43 }
  0xb8   :  { %2443 = vmatmul.mubr.msk.f32.gmra.mrb[90].mxu0 %vm95_vm1, %v3010_v45 }
  0xb9   :  { %2445 = vmatprep.mubr.msk.f32.mxu0 %vm95_vm1, %v3018_v47 }
  0xbc   :  { %2446 = vmatmul.mubr.msk.f32.gmra.mrb[92].mxu0 %vm95_vm1, %v3032_v49 }
  0xbd   :  { %2448 = vmatprep.mubr.msk.f32.mxu0 %vm95_vm1, %v3040_v51 }
  0xc0   :  { %2449 = vmatmul.mubr.msk.f32.gmra.mrb[94].mxu0 %vm95_vm1, %v3054_v53 }
  0xd7   :  { %v2307_v2 = vpop.f32.mrb[0].mxu0 }
  0xd8   :  { %v364_v3 = vadd.f32 %v2307_v2, %v3224_v1  ;;  %v358_v4 = vpop.f32.mrb[1].mxu0 }
  0xd9   :  { %v359_v5 = vadd.f32 %v3224_v1, %v358_v4 }
  0xda   :  { %v678_v9 = vmax.f32 %v364_v3, 0.0 }
  0xdb   :  { %v677_v6 = vmax.f32 %v359_v5, 0.0  ;;  %v2310_v7 = vpop.f32.mrb[2].mxu0 }
  0xdc   :  { %v374_v10 = vadd.f32 %v2310_v7, %v3224_v1  ;;  %v368_v11 = vpop.f32.mrb[3].mxu0 }
  0xdd   :  { %v369_v12 = vadd.f32 %v3224_v1, %v368_v11  ;;  %2501 = vmatprep.mubr.msk.f32.mxu1 %vm1131_vm2, %v677_v6 }
  0xde   :  { %2502 = vmatmul.mubr.msk.f32.vlgmr.msra.gmra.mrb[32].mxu1 %vm1131_vm2, %v678_v9  ;;  %v680_v16 = vmax.f32 %v374_v10, 0.0 }
  0xdf   :  { %v679_v13 = vmax.f32 %v369_v12, 0.0  ;;  %v2313_v14 = vpop.f32.mrb[4].mxu0 }
  0xe0   :  { %v384_v17 = vadd.f32 %v2313_v14, %v3224_v1  ;;  %v378_v18 = vpop.f32.mrb[5].mxu0 }
  0xe1   :  { %v379_v19 = vadd.f32 %v3224_v1, %v378_v18  ;;  %2504 = vmatprep.mubr.msk.f32.mxu1 %vm1131_vm2, %v679_v13 }
  0xe2   :  { %2505 = vmatmul.mubr.msk.f32.gmra.mrb[34].mxu1 %vm1131_vm2, %v680_v16  ;;  %v682_v22 = vmax.f32 %v384_v17, 0.0 }
  0xe3   :  { %v681_v20 = vmax.f32 %v379_v19, 0.0  ;;  %v2316_v21 = vpop.f32.mrb[6].mxu0 }
  0xe4   :  { %v394_v23 = vadd.f32 %v2316_v21, %v3224_v1  ;;  %v388_v24 = vpop.f32.mrb[7].mxu0 }
  0xe5   :  { %v389_v25 = vadd.f32 %v3224_v1, %v388_v24  ;;  %2507 = vmatprep.mubr.msk.f32.mxu1 %vm1131_vm2, %v681_v20 }
  0xe6   :  { %2508 = vmatmul.mubr.msk.f32.gmra.mrb[36].mxu1 %vm1131_vm2, %v682_v22  ;;  %v684_v28 = vmax.f32 %v394_v23, 0.0 }
  0xe7   :  { %v683_v26 = vmax.f32 %v389_v25, 0.0  ;;  %v2319_v27 = vpop.f32.mrb[8].mxu0 }
  0xe8   :  { %v404_v29 = vadd.f32 %v2319_v27, %v3224_v1  ;;  %v398_v30 = vpop.f32.mrb[9].mxu0 }
  0xe9   :  { %v399_v31 = vadd.f32 %v3224_v1, %v398_v30  ;;  %2510 = vmatprep.mubr.msk.f32.mxu1 %vm1131_vm2, %v683_v26 }
  0xea   :  { %2511 = vmatmul.mubr.msk.f32.gmra.mrb[38].mxu1 %vm1131_vm2, %v684_v28  ;;  %v686_v34 = vmax.f32 %v404_v29, 0.0 }
  0xeb   :  { %v685_v32 = vmax.f32 %v399_v31, 0.0  ;;  %v2322_v33 = vpop.f32.mrb[10].mxu0 }
  0xec   :  { %v414_v35 = vadd.f32 %v2322_v33, %v3224_v1  ;;  %v408_v36 = vpop.f32.mrb[11].mxu0 }
  0xed   :  { %v409_v37 = vadd.f32 %v3224_v1, %v408_v36  ;;  %2513 = vmatprep.mubr.msk.f32.mxu1 %vm1131_vm2, %v685_v32 }
  0xee   :  { %2514 = vmatmul.mubr.msk.f32.gmra.mrb[40].mxu1 %vm1131_vm2, %v686_v34  ;;  %v688_v40 = vmax.f32 %v414_v35, 0.0 }
  0xef   :  { %v687_v38 = vmax.f32 %v409_v37, 0.0  ;;  %v2325_v39 = vpop.f32.mrb[12].mxu0 }
  0xf0   :  { %v424_v41 = vadd.f32 %v2325_v39, %v3224_v1  ;;  %v418_v42 = vpop.f32.mrb[13].mxu0 }
  0xf1   :  { %v419_v43 = vadd.f32 %v3224_v1, %v418_v42  ;;  %2516 = vmatprep.mubr.msk.f32.mxu1 %vm1131_vm2, %v687_v38 }
  0xf2   :  { %2517 = vmatmul.mubr.msk.f32.gmra.mrb[42].mxu1 %vm1131_vm2, %v688_v40  ;;  %v690_v46 = vmax.f32 %v424_v41, 0.0 }
  0xf3   :  { %v689_v44 = vmax.f32 %v419_v43, 0.0  ;;  %v2328_v45 = vpop.f32.mrb[14].mxu0 }
  0xf4   :  { %v434_v47 = vadd.f32 %v2328_v45, %v3224_v1  ;;  %v428_v48 = vpop.f32.mrb[15].mxu0 }
  0xf5   :  { %v429_v49 = vadd.f32 %v3224_v1, %v428_v48  ;;  %2519 = vmatprep.mubr.msk.f32.mxu1 %vm1131_vm2, %v689_v44 }
  0xf6   :  { %2520 = vmatmul.mubr.msk.f32.gmra.mrb[44].mxu1 %vm1131_vm2, %v690_v46  ;;  %v692_v52 = vmax.f32 %v434_v47, 0.0 }
  0xf7   :  { %v691_v50 = vmax.f32 %v429_v49, 0.0  ;;  %v2331_v51 = vpop.f32.mrb[16].mxu0 }
  0xf8   :  { %v444_v53 = vadd.f32 %v2331_v51, %v3224_v1  ;;  %v438_v54 = vpop.f32.mrb[17].mxu0 }
  0xf9   :  { %v439_v55 = vadd.f32 %v3224_v1, %v438_v54  ;;  %2522 = vmatprep.mubr.msk.f32.mxu1 %vm1131_vm2, %v691_v50 }
  0xfa   :  { %2523 = vmatmul.mubr.msk.f32.gmra.mrb[46].mxu1 %vm1131_vm2, %v692_v52  ;;  %v694_v58 = vmax.f32 %v444_v53, 0.0 }
  0xfb   :  { %v693_v56 = vmax.f32 %v439_v55, 0.0  ;;  %v2334_v57 = vpop.f32.mrb[18].mxu0 }
  0xfc   :  { %v454_v59 = vadd.f32 %v2334_v57, %v3224_v1  ;;  %v448_v60 = vpop.f32.mrb[19].mxu0 }
  0xfd   :  { %v449_v61 = vadd.f32 %v3224_v1, %v448_v60  ;;  %2525 = vmatprep.mubr.msk.f32.mxu1 %vm1131_vm2, %v693_v56 }
  0xfe   :  { %2526 = vmatmul.mubr.msk.f32.gmra.mrb[48].mxu1 %vm1131_vm2, %v694_v58  ;;  %v696_v0 = vmax.f32 %v454_v59, 0.0 }
  0xff   :  { %v695_v62 = vmax.f32 %v449_v61, 0.0  ;;  %v2337_v63 = vpop.f32.mrb[20].mxu0 }
 0x100   :  { %v464_v8 = vadd.f32 %v2337_v63, %v3224_v1  ;;  %v458_v15 = vpop.f32.mrb[21].mxu0 }
 0x101   :  { %v459_v2 = vadd.f32 %v3224_v1, %v458_v15  ;;  %2528 = vmatprep.mubr.msk.f32.mxu1 %vm1131_vm2, %v695_v62 }
 0x102   :  { %2529 = vmatmul.mubr.msk.f32.gmra.mrb[50].mxu1 %vm1131_vm2, %v696_v0  ;;  %v698_v5 = vmax.f32 %v464_v8, 0.0 }
 0x103   :  { %v697_v3 = vmax.f32 %v459_v2, 0.0  ;;  %v2340_v4 = vpop.f32.mrb[22].mxu0 }
 0x104   :  { %v474_v6 = vadd.f32 %v2340_v4, %v3224_v1  ;;  %v468_v7 = vpop.f32.mrb[23].mxu0 }
 0x105   :  { %v469_v9 = vadd.f32 %v3224_v1, %v468_v7  ;;  %2531 = vmatprep.mubr.msk.f32.mxu1 %vm1131_vm2, %v697_v3 }
 0x106   :  { %2532 = vmatmul.mubr.msk.f32.gmra.mrb[52].mxu1 %vm1131_vm2, %v698_v5  ;;  %v700_v12 = vmax.f32 %v474_v6, 0.0 }
 0x107   :  { %v699_v10 = vmax.f32 %v469_v9, 0.0  ;;  %v2343_v11 = vpop.f32.mrb[24].mxu0 }
 0x108   :  { %v484_v13 = vadd.f32 %v2343_v11, %v3224_v1  ;;  %v478_v14 = vpop.f32.mrb[25].mxu0 }
 0x109   :  { %v479_v16 = vadd.f32 %v3224_v1, %v478_v14  ;;  %2534 = vmatprep.mubr.msk.f32.mxu1 %vm1131_vm2, %v699_v10 }
 0x10a   :  { %2535 = vmatmul.mubr.msk.f32.gmra.mrb[54].mxu1 %vm1131_vm2, %v700_v12  ;;  %v702_v19 = vmax.f32 %v484_v13, 0.0 }
 0x10b   :  { %v701_v17 = vmax.f32 %v479_v16, 0.0  ;;  %v2346_v18 = vpop.f32.mrb[26].mxu0 }
 0x10c   :  { %v494_v20 = vadd.f32 %v2346_v18, %v3224_v1  ;;  %v488_v21 = vpop.f32.mrb[27].mxu0 }
 0x10d   :  { %v489_v22 = vadd.f32 %v3224_v1, %v488_v21  ;;  %2537 = vmatprep.mubr.msk.f32.mxu1 %vm1131_vm2, %v701_v17 }
 0x10e   :  { %2538 = vmatmul.mubr.msk.f32.gmra.mrb[56].mxu1 %vm1131_vm2, %v702_v19  ;;  %v704_v25 = vmax.f32 %v494_v20, 0.0 }
 0x10f   :  { %v703_v23 = vmax.f32 %v489_v22, 0.0  ;;  %v2349_v24 = vpop.f32.mrb[28].mxu0 }
 0x110   :  { %v504_v26 = vadd.f32 %v2349_v24, %v3224_v1  ;;  %v498_v27 = vpop.f32.mrb[29].mxu0 }
 0x111   :  { %v499_v28 = vadd.f32 %v3224_v1, %v498_v27  ;;  %2540 = vmatprep.mubr.msk.f32.mxu1 %vm1131_vm2, %v703_v23 }
 0x112   :  { %2541 = vmatmul.mubr.msk.f32.gmra.mrb[58].mxu1 %vm1131_vm2, %v704_v25  ;;  %v706_v31 = vmax.f32 %v504_v26, 0.0 }
 0x113   :  { %v705_v29 = vmax.f32 %v499_v28, 0.0  ;;  %v2352_v30 = vpop.f32.mrb[30].mxu0 }
 0x114   :  { %v514_v32 = vadd.f32 %v2352_v30, %v3224_v1  ;;  %v508_v33 = vpop.f32.mrb[31].mxu0 }
 0x115   :  { %v509_v34 = vadd.f32 %v3224_v1, %v508_v33  ;;  %2543 = vmatprep.mubr.msk.f32.mxu1 %vm1131_vm2, %v705_v29 }
 0x116   :  { %2544 = vmatmul.mubr.msk.f32.gmra.mrb[60].mxu1 %vm1131_vm2, %v706_v31  ;;  %v708_v37 = vmax.f32 %v514_v32, 0.0 }
 0x117   :  { %v707_v35 = vmax.f32 %v509_v34, 0.0  ;;  %v2355_v36 = vpop.f32.mrb[32].mxu0 }
 0x118   :  { %v524_v38 = vadd.f32 %v2355_v36, %v3224_v1  ;;  %v518_v39 = vpop.f32.mrb[33].mxu0 }
 0x119   :  { %v519_v40 = vadd.f32 %v3224_v1, %v518_v39  ;;  %2546 = vmatprep.mubr.msk.f32.mxu1 %vm1131_vm2, %v707_v35 }
 0x11a   :  { %2547 = vmatmul.mubr.msk.f32.gmra.mrb[62].mxu1 %vm1131_vm2, %v708_v37  ;;  %v710_v43 = vmax.f32 %v524_v38, 0.0 }
 0x11b   :  { %v709_v41 = vmax.f32 %v519_v40, 0.0  ;;  %v2358_v42 = vpop.f32.mrb[34].mxu0 }
 0x11c   :  { %v534_v44 = vadd.f32 %v2358_v42, %v3224_v1  ;;  %v528_v45 = vpop.f32.mrb[35].mxu0 }
 0x11d   :  { %v529_v46 = vadd.f32 %v3224_v1, %v528_v45  ;;  %2549 = vmatprep.mubr.msk.f32.mxu1 %vm1131_vm2, %v709_v41 }
 0x11e   :  { %2550 = vmatmul.mubr.msk.f32.gmra.mrb[0].mxu1 %vm1131_vm2, %v710_v43  ;;  %v712_v49 = vmax.f32 %v534_v44, 0.0 }
 0x11f   :  { %v711_v47 = vmax.f32 %v529_v46, 0.0  ;;  %v2361_v48 = vpop.f32.mrb[36].mxu0 }
 0x120   :  { %v544_v50 = vadd.f32 %v2361_v48, %v3224_v1  ;;  %v538_v51 = vpop.f32.mrb[37].mxu0 }
 0x121   :  { %v539_v52 = vadd.f32 %v3224_v1, %v538_v51  ;;  %2552 = vmatprep.mubr.msk.f32.mxu1 %vm1131_vm2, %v711_v47 }
 0x122   :  { %2553 = vmatmul.mubr.msk.f32.gmra.mrb[2].mxu1 %vm1131_vm2, %v712_v49  ;;  %v714_v55 = vmax.f32 %v544_v50, 0.0 }
 0x123   :  { %v713_v53 = vmax.f32 %v539_v52, 0.0  ;;  %v2364_v54 = vpop.f32.mrb[38].mxu0 }
 0x124   :  { %v554_v56 = vadd.f32 %v2364_v54, %v3224_v1  ;;  %v548_v57 = vpop.f32.mrb[39].mxu0 }
 0x125   :  { %v549_v58 = vadd.f32 %v3224_v1, %v548_v57  ;;  %2555 = vmatprep.mubr.msk.f32.mxu1 %vm1131_vm2, %v713_v53 }
 0x126   :  { %2556 = vmatmul.mubr.msk.f32.gmra.mrb[4].mxu1 %vm1131_vm2, %v714_v55  ;;  %v716_v61 = vmax.f32 %v554_v56, 0.0 }
 0x127   :  { %v715_v59 = vmax.f32 %v549_v58, 0.0  ;;  %v2367_v60 = vpop.f32.mrb[40].mxu0 }
 0x128   :  { %v564_v62 = vadd.f32 %v2367_v60, %v3224_v1  ;;  %v558_v63 = vpop.f32.mrb[41].mxu0 }
 0x129   :  { %v559_v0 = vadd.f32 %v3224_v1, %v558_v63  ;;  %2558 = vmatprep.mubr.msk.f32.mxu1 %vm1131_vm2, %v715_v59 }
 0x12a   :  { %2559 = vmatmul.mubr.msk.f32.gmra.mrb[6].mxu1 %vm1131_vm2, %v716_v61  ;;  %v718_v2 = vmax.f32 %v564_v62, 0.0 }
 0x12b   :  { %v717_v8 = vmax.f32 %v559_v0, 0.0  ;;  %v2370_v15 = vpop.f32.mrb[42].mxu0 }
 0x12c   :  { %v574_v3 = vadd.f32 %v2370_v15, %v3224_v1  ;;  %v568_v4 = vpop.f32.mrb[43].mxu0 }
 0x12d   :  { %v569_v5 = vadd.f32 %v3224_v1, %v568_v4  ;;  %2561 = vmatprep.mubr.msk.f32.mxu1 %vm1131_vm2, %v717_v8 }
 0x12e   :  { %2562 = vmatmul.mubr.msk.f32.gmra.mrb[8].mxu1 %vm1131_vm2, %v718_v2  ;;  %v720_v9 = vmax.f32 %v574_v3, 0.0 }
 0x12f   :  { %v719_v6 = vmax.f32 %v569_v5, 0.0  ;;  %v2373_v7 = vpop.f32.mrb[44].mxu0 }
 0x130   :  { %v584_v10 = vadd.f32 %v2373_v7, %v3224_v1  ;;  %v578_v11 = vpop.f32.mrb[45].mxu0 }
 0x131   :  { %v579_v12 = vadd.f32 %v3224_v1, %v578_v11  ;;  %2564 = vmatprep.mubr.msk.f32.mxu1 %vm1131_vm2, %v719_v6 }
 0x132   :  { %2565 = vmatmul.mubr.msk.f32.gmra.mrb[10].mxu1 %vm1131_vm2, %v720_v9  ;;  %v722_v16 = vmax.f32 %v584_v10, 0.0 }
 0x133   :  { %v721_v13 = vmax.f32 %v579_v12, 0.0  ;;  %v2376_v14 = vpop.f32.mrb[46].mxu0 }
 0x134   :  { %v594_v17 = vadd.f32 %v2376_v14, %v3224_v1  ;;  %v588_v18 = vpop.f32.mrb[47].mxu0 }
 0x135   :  { %v589_v19 = vadd.f32 %v3224_v1, %v588_v18  ;;  %2567 = vmatprep.mubr.msk.f32.mxu1 %vm1131_vm2, %v721_v13 }
 0x136   :  { %2568 = vmatmul.mubr.msk.f32.gmra.mrb[12].mxu1 %vm1131_vm2, %v722_v16  ;;  %v724_v22 = vmax.f32 %v594_v17, 0.0 }
 0x137   :  { %v723_v20 = vmax.f32 %v589_v19, 0.0  ;;  %v2379_v21 = vpop.f32.mrb[48].mxu0 }
 0x138   :  { %v604_v23 = vadd.f32 %v2379_v21, %v3224_v1  ;;  %v598_v24 = vpop.f32.mrb[49].mxu0 }
 0x139   :  { %v599_v25 = vadd.f32 %v3224_v1, %v598_v24  ;;  %2570 = vmatprep.mubr.msk.f32.mxu1 %vm1131_vm2, %v723_v20 }
 0x13a   :  { %2571 = vmatmul.mubr.msk.f32.gmra.mrb[14].mxu1 %vm1131_vm2, %v724_v22  ;;  %v726_v28 = vmax.f32 %v604_v23, 0.0 }
 0x13b   :  { %v725_v26 = vmax.f32 %v599_v25, 0.0  ;;  %v2382_v27 = vpop.f32.mrb[50].mxu0 }
 0x13c   :  { %v614_v29 = vadd.f32 %v2382_v27, %v3224_v1  ;;  %v608_v30 = vpop.f32.mrb[51].mxu0 }
 0x13d   :  { %v609_v31 = vadd.f32 %v3224_v1, %v608_v30  ;;  %2573 = vmatprep.mubr.msk.f32.mxu1 %vm1131_vm2, %v725_v26 }
 0x13e   :  { %2574 = vmatmul.mubr.msk.f32.gmra.mrb[16].mxu1 %vm1131_vm2, %v726_v28  ;;  %v728_v34 = vmax.f32 %v614_v29, 0.0 }
 0x13f   :  { %v727_v32 = vmax.f32 %v609_v31, 0.0  ;;  %v2385_v33 = vpop.f32.mrb[52].mxu0 }
 0x140   :  { %v624_v35 = vadd.f32 %v2385_v33, %v3224_v1  ;;  %v618_v36 = vpop.f32.mrb[53].mxu0 }
 0x141   :  { %v619_v37 = vadd.f32 %v3224_v1, %v618_v36  ;;  %2576 = vmatprep.mubr.msk.f32.mxu1 %vm1131_vm2, %v727_v32 }
 0x142   :  { %2577 = vmatmul.mubr.msk.f32.gmra.mrb[18].mxu1 %vm1131_vm2, %v728_v34  ;;  %v730_v40 = vmax.f32 %v624_v35, 0.0 }
 0x143   :  { %v729_v38 = vmax.f32 %v619_v37, 0.0  ;;  %v2388_v39 = vpop.f32.mrb[54].mxu0 }
 0x144   :  { %v634_v41 = vadd.f32 %v2388_v39, %v3224_v1  ;;  %v628_v42 = vpop.f32.mrb[55].mxu0  ;;  %v3405_v39 = vld [vmem:[%s3756_s5] ss:$0 sm:$0xff] }
 0x145   :  { %v629_v43 = vadd.f32 %v3224_v1, %v628_v42  ;;  %2579 = vmatprep.mubr.msk.f32.mxu1 %vm1131_vm2, %v729_v38 }
 0x146   :  { %2580 = vmatmul.mubr.msk.f32.gmra.mrb[20].mxu1 %vm1131_vm2, %v730_v40  ;;  %v732_v46 = vmax.f32 %v634_v41, 0.0 }
 0x147   :  { %v731_v44 = vmax.f32 %v629_v43, 0.0  ;;  %v2391_v45 = vpop.f32.mrb[56].mxu0 }
 0x148   :  { %v644_v47 = vadd.f32 %v2391_v45, %v3224_v1  ;;  %v638_v48 = vpop.f32.mrb[57].mxu0 }
 0x149   :  { %v639_v49 = vadd.f32 %v3224_v1, %v638_v48  ;;  %2582 = vmatprep.mubr.msk.f32.mxu1 %vm1131_vm2, %v731_v44 }
 0x14a   :  { %2583 = vmatmul.mubr.msk.f32.gmra.mrb[22].mxu1 %vm1131_vm2, %v732_v46  ;;  %v734_v52 = vmax.f32 %v644_v47, 0.0 }
 0x14b   :  { %v733_v50 = vmax.f32 %v639_v49, 0.0  ;;  %v2394_v51 = vpop.f32.mrb[58].mxu0 }
 0x14c   :  { %v654_v53 = vadd.f32 %v2394_v51, %v3224_v1  ;;  %v648_v54 = vpop.f32.mrb[59].mxu0 }
 0x14d   :  { %v649_v55 = vadd.f32 %v3224_v1, %v648_v54  ;;  %2585 = vmatprep.mubr.msk.f32.mxu1 %vm1131_vm2, %v733_v50 }
 0x14e   :  { %2586 = vmatmul.mubr.msk.f32.gmra.mrb[24].mxu1 %vm1131_vm2, %v734_v52  ;;  %v736_v58 = vmax.f32 %v654_v53, 0.0 }
 0x14f   :  { %v735_v56 = vmax.f32 %v649_v55, 0.0  ;;  %v2397_v57 = vpop.f32.mrb[60].mxu0 }
 0x150   :  { %v664_v59 = vadd.f32 %v2397_v57, %v3224_v1  ;;  %v658_v60 = vpop.f32.mrb[61].mxu0 }
 0x151   :  { %v659_v61 = vadd.f32 %v3224_v1, %v658_v60  ;;  %2588 = vmatprep.mubr.msk.f32.mxu1 %vm1131_vm2, %v735_v56 }
 0x152   :  { %2589 = vmatmul.mubr.msk.f32.gmra.mrb[26].mxu1 %vm1131_vm2, %v736_v58  ;;  %v738_v0 = vmax.f32 %v664_v59, 0.0 }
 0x153   :  { %v737_v62 = vmax.f32 %v659_v61, 0.0  ;;  %v2400_v63 = vpop.f32.mrb[62].mxu0 }
 0x154   :  { %v674_v8 = vadd.f32 %v2400_v63, %v3224_v1  ;;  %v668_v15 = vpop.f32.mrb[63].mxu0 }
 0x155   :  { %v669_v2 = vadd.f32 %v3224_v1, %v668_v15  ;;  %2591 = vmatprep.mubr.msk.f32.mxu1 %vm1131_vm2, %v737_v62 }
 0x156   :  { %2592 = vmatmul.mubr.msk.f32.gmra.mrb[28].mxu1 %vm1131_vm2, %v738_v0  ;;  %v740_v5 = vmax.f32 %v674_v8, 0.0 }
 0x157   :  { %v739_v3 = vmax.f32 %v669_v2, 0.0  ;;  %v2405_v4 = vpop.f32.mrb[64].mxu0 }
 0x158   :  { %v812_v6 = vpop.f32.mrb[65].mxu0 }
 0x159   :  { %2594 = vmatprep.mubr.msk.f32.mxu1 %vm1131_vm2, %v739_v3 }
 0x15a   :  { %2595 = vmatmul.mubr.msk.f32.gmra.mrb[30].mxu1 %vm1131_vm2, %v740_v5 }
 0x15b   :  { %v2408_v7 = vpop.f32.mrb[66].mxu0 }
 0x15c   :  { %v822_v9 = vpop.f32.mrb[67].mxu0 }
 0x15f   :  { %v2411_v10 = vpop.f32.mrb[68].mxu0 }
 0x160   :  { %v832_v11 = vpop.f32.mrb[69].mxu0 }
 0x163   :  { %v2414_v12 = vpop.f32.mrb[70].mxu0 }
 0x164   :  { %v842_v13 = vpop.f32.mrb[71].mxu0 }
 0x167   :  { %v3354_v14 = vpop.f32.mrb[72].mxu0 }
 0x168   :  { %v3356_v1 = vpop.f32.mrb[73].mxu0 }
 0x16b   :  { %v3358_v16 = vpop.f32.mrb[74].mxu0 }
 0x16c   :  { %v3360_v17 = vpop.f32.mrb[75].mxu0 }
 0x16f   :  { %v3362_v18 = vpop.f32.mrb[76].mxu0 }
 0x170   :  { %v3364_v19 = vpop.f32.mrb[77].mxu0 }
 0x173   :  { %v3366_v20 = vpop.f32.mrb[78].mxu0 }
 0x174   :  { %v3368_v21 = vpop.f32.mrb[79].mxu0 }
 0x177   :  { %v3370_v22 = vpop.f32.mrb[80].mxu0 }
 0x178   :  { %v3372_v23 = vpop.f32.mrb[81].mxu0 }
 0x17b   :  { %v3374_v24 = vpop.f32.mrb[82].mxu0 }
 0x17c   :  { %v3376_v25 = vpop.f32.mrb[83].mxu0 }
 0x17f   :  { %v3378_v26 = vpop.f32.mrb[84].mxu0 }
 0x180   :  { %v3380_v27 = vpop.f32.mrb[85].mxu0 }
 0x183   :  { %v3382_v28 = vpop.f32.mrb[86].mxu0 }
 0x184   :  { %v3384_v29 = vpop.f32.mrb[87].mxu0 }
 0x187   :  { %v3386_v30 = vpop.f32.mrb[88].mxu0 }
 0x188   :  { %v3388_v31 = vpop.f32.mrb[89].mxu0 }
 0x18b   :  { %v3390_v32 = vpop.f32.mrb[90].mxu0 }
 0x18c   :  { %v3392_v33 = vpop.f32.mrb[91].mxu0 }
 0x18f   :  { %v3394_v34 = vpop.f32.mrb[92].mxu0 }
 0x190   :  { %v3396_v35 = vpop.f32.mrb[93].mxu0 }
 0x193   :  { %v3398_v36 = vpop.f32.mrb[94].mxu0 }
 0x194   :  { %v3400_v37 = vpop.f32.mrb[95].mxu0 }
 0x1b1   :  { %v2503_v38 = vpop.f32.mrb[32].mxu1 }
 0x1b2   :  { %v1396_v40 = vadd.f32 %v2503_v38, %v2405_v4  ;;  %v1390_v41 = vpop.f32.mrb[33].mxu1 }
 0x1b3   :  { %v1391_v42 = vadd.f32 %v1390_v41, %v812_v6 }
 0x1b4   :  { %v1717_v43 = vadd.f32 %v3405_v39, %v1396_v40 }
 0x1b5   :  { %v1716_v44 = vadd.f32 %v3405_v39, %v1391_v42  ;;  %v2506_v45 = vpop.f32.mrb[34].mxu1 }
 0x1b6   :  { %v1781_v46 = vmax.f32 %v1717_v43, 0.0  ;;  %v1406_v47 = vadd.f32 %v2506_v45, %v2408_v7  ;;  %v1400_v48 = vpop.f32.mrb[35].mxu1 }
 0x1b7   :  { %v1780_v49 = vmax.f32 %v1716_v44, 0.0  ;;  %v1401_v50 = vadd.f32 %v1400_v48, %v822_v9 }
 0x1b8   :  { %1845 = vst.msk [vmem:[%s3757_s6 + $0x8] sm:$0xff] %vm1131_vm2, %v1781_v46  ;;  %v1719_v51 = vadd.f32 %v3405_v39, %v1406_v47 }
 0x1b9   :  { %1844 = vst.msk [vmem:[%s3757_s6] sm:$0xff] %vm1131_vm2, %v1780_v49  ;;  %v1718_v52 = vadd.f32 %v3405_v39, %v1401_v50  ;;  %v2509_v53 = vpop.f32.mrb[36].mxu1 }
 0x1ba   :  { %v1783_v54 = vmax.f32 %v1719_v51, 0.0  ;;  %v1416_v55 = vadd.f32 %v2509_v53, %v2411_v10  ;;  %v1410_v56 = vpop.f32.mrb[37].mxu1 }
 0x1bb   :  { %v1782_v57 = vmax.f32 %v1718_v52, 0.0  ;;  %v1411_v58 = vadd.f32 %v1410_v56, %v832_v11 }
 0x1bc   :  { %1847 = vst.msk [vmem:[%s3757_s6 + $0x18] sm:$0xff] %vm1131_vm2, %v1783_v54  ;;  %v1721_v59 = vadd.f32 %v3405_v39, %v1416_v55 }
 0x1bd   :  { %1846 = vst.msk [vmem:[%s3757_s6 + $0x10] sm:$0xff] %vm1131_vm2, %v1782_v57  ;;  %v1720_v60 = vadd.f32 %v3405_v39, %v1411_v58  ;;  %v2512_v61 = vpop.f32.mrb[38].mxu1 }
 0x1be   :  { %v1785_v62 = vmax.f32 %v1721_v59, 0.0  ;;  %v1426_v63 = vadd.f32 %v2512_v61, %v2414_v12  ;;  %v1420_v0 = vpop.f32.mrb[39].mxu1 }
 0x1bf   :  { %v1784_v8 = vmax.f32 %v1720_v60, 0.0  ;;  %v1421_v15 = vadd.f32 %v1420_v0, %v842_v13 }
 0x1c0   :  { %1849 = vst.msk [vmem:[%s3757_s6 + $0x28] sm:$0xff] %vm1131_vm2, %v1785_v62  ;;  %v1723_v2 = vadd.f32 %v3405_v39, %v1426_v63 }
 0x1c1   :  { %1848 = vst.msk [vmem:[%s3757_s6 + $0x20] sm:$0xff] %vm1131_vm2, %v1784_v8  ;;  %v1722_v3 = vadd.f32 %v3405_v39, %v1421_v15  ;;  %v2515_v4 = vpop.f32.mrb[40].mxu1 }
 0x1c2   :  { %v1787_v5 = vmax.f32 %v1723_v2, 0.0  ;;  %v1436_v6 = vadd.f32 %v2515_v4, %v3354_v14  ;;  %v1430_v7 = vpop.f32.mrb[41].mxu1 }
 0x1c3   :  { %v1786_v9 = vmax.f32 %v1722_v3, 0.0  ;;  %v1431_v10 = vadd.f32 %v1430_v7, %v3356_v1 }
 0x1c4   :  { %1851 = vst.msk [vmem:[%s3757_s6 + $0x38] sm:$0xff] %vm1131_vm2, %v1787_v5  ;;  %v1725_v11 = vadd.f32 %v3405_v39, %v1436_v6 }
 0x1c5   :  { %1850 = vst.msk [vmem:[%s3757_s6 + $0x30] sm:$0xff] %vm1131_vm2, %v1786_v9  ;;  %v1724_v12 = vadd.f32 %v3405_v39, %v1431_v10  ;;  %v2518_v13 = vpop.f32.mrb[42].mxu1 }
 0x1c6   :  { %v1789_v14 = vmax.f32 %v1725_v11, 0.0  ;;  %v1446_v38 = vadd.f32 %v2518_v13, %v3358_v16  ;;  %v1440_v40 = vpop.f32.mrb[43].mxu1 }
 0x1c7   :  { %v1788_v1 = vmax.f32 %v1724_v12, 0.0  ;;  %v1441_v41 = vadd.f32 %v1440_v40, %v3360_v17 }
 0x1c8   :  { %1853 = vst.msk [vmem:[%s3757_s6 + $0x48] sm:$0xff] %vm1131_vm2, %v1789_v14  ;;  %v1727_v42 = vadd.f32 %v3405_v39, %v1446_v38 }
 0x1c9   :  { %1852 = vst.msk [vmem:[%s3757_s6 + $0x40] sm:$0xff] %vm1131_vm2, %v1788_v1  ;;  %v1726_v43 = vadd.f32 %v3405_v39, %v1441_v41  ;;  %v2521_v44 = vpop.f32.mrb[44].mxu1 }
 0x1ca   :  { %v1791_v16 = vmax.f32 %v1727_v42, 0.0  ;;  %v1456_v45 = vadd.f32 %v2521_v44, %v3362_v18  ;;  %v1450_v46 = vpop.f32.mrb[45].mxu1 }
 0x1cb   :  { %v1790_v17 = vmax.f32 %v1726_v43, 0.0  ;;  %v1451_v47 = vadd.f32 %v1450_v46, %v3364_v19 }
 0x1cc   :  { %1855 = vst.msk [vmem:[%s3757_s6 + $0x58] sm:$0xff] %vm1131_vm2, %v1791_v16  ;;  %v1729_v48 = vadd.f32 %v3405_v39, %v1456_v45 }
 0x1cd   :  { %1854 = vst.msk [vmem:[%s3757_s6 + $0x50] sm:$0xff] %vm1131_vm2, %v1790_v17  ;;  %v1728_v49 = vadd.f32 %v3405_v39, %v1451_v47  ;;  %v2524_v50 = vpop.f32.mrb[46].mxu1 }
 0x1ce   :  { %v1793_v18 = vmax.f32 %v1729_v48, 0.0  ;;  %v1466_v51 = vadd.f32 %v2524_v50, %v3366_v20  ;;  %v1460_v52 = vpop.f32.mrb[47].mxu1 }
 0x1cf   :  { %v1792_v19 = vmax.f32 %v1728_v49, 0.0  ;;  %v1461_v53 = vadd.f32 %v1460_v52, %v3368_v21 }
 0x1d0   :  { %1857 = vst.msk [vmem:[%s3757_s6 + $0x68] sm:$0xff] %vm1131_vm2, %v1793_v18  ;;  %v1731_v54 = vadd.f32 %v3405_v39, %v1466_v51 }
 0x1d1   :  { %1856 = vst.msk [vmem:[%s3757_s6 + $0x60] sm:$0xff] %vm1131_vm2, %v1792_v19  ;;  %v1730_v55 = vadd.f32 %v3405_v39, %v1461_v53  ;;  %v2527_v56 = vpop.f32.mrb[48].mxu1 }
 0x1d2   :  { %v1795_v20 = vmax.f32 %v1731_v54, 0.0  ;;  %v1476_v57 = vadd.f32 %v2527_v56, %v3370_v22  ;;  %v1470_v58 = vpop.f32.mrb[49].mxu1 }
 0x1d3   :  { %v1794_v21 = vmax.f32 %v1730_v55, 0.0  ;;  %v1471_v59 = vadd.f32 %v1470_v58, %v3372_v23 }
 0x1d4   :  { %1859 = vst.msk [vmem:[%s3757_s6 + $0x78] sm:$0xff] %vm1131_vm2, %v1795_v20  ;;  %v1733_v60 = vadd.f32 %v3405_v39, %v1476_v57 }
 0x1d5   :  { %1858 = vst.msk [vmem:[%s3757_s6 + $0x70] sm:$0xff] %vm1131_vm2, %v1794_v21  ;;  %v1732_v61 = vadd.f32 %v3405_v39, %v1471_v59  ;;  %v2530_v62 = vpop.f32.mrb[50].mxu1 }
 0x1d6   :  { %v1797_v22 = vmax.f32 %v1733_v60, 0.0  ;;  %v1486_v63 = vadd.f32 %v2530_v62, %v3374_v24  ;;  %v1480_v0 = vpop.f32.mrb[51].mxu1 }
 0x1d7   :  { %v1796_v23 = vmax.f32 %v1732_v61, 0.0  ;;  %v1481_v8 = vadd.f32 %v1480_v0, %v3376_v25 }
 0x1d8   :  { %1861 = vst.msk [vmem:[%s3757_s6 + $0x88] sm:$0xff] %vm1131_vm2, %v1797_v22  ;;  %v1735_v15 = vadd.f32 %v3405_v39, %v1486_v63 }
 0x1d9   :  { %1860 = vst.msk [vmem:[%s3757_s6 + $0x80] sm:$0xff] %vm1131_vm2, %v1796_v23  ;;  %v1734_v2 = vadd.f32 %v3405_v39, %v1481_v8  ;;  %v2533_v3 = vpop.f32.mrb[52].mxu1 }
 0x1da   :  { %v1799_v24 = vmax.f32 %v1735_v15, 0.0  ;;  %v1496_v4 = vadd.f32 %v2533_v3, %v3378_v26  ;;  %v1490_v5 = vpop.f32.mrb[53].mxu1 }
 0x1db   :  { %v1798_v25 = vmax.f32 %v1734_v2, 0.0  ;;  %v1491_v6 = vadd.f32 %v1490_v5, %v3380_v27 }
 0x1dc   :  { %1863 = vst.msk [vmem:[%s3757_s6 + $0x98] sm:$0xff] %vm1131_vm2, %v1799_v24  ;;  %v1737_v7 = vadd.f32 %v3405_v39, %v1496_v4 }
 0x1dd   :  { %1862 = vst.msk [vmem:[%s3757_s6 + $0x90] sm:$0xff] %vm1131_vm2, %v1798_v25  ;;  %v1736_v9 = vadd.f32 %v3405_v39, %v1491_v6  ;;  %v2536_v10 = vpop.f32.mrb[54].mxu1 }
 0x1de   :  { %v1801_v26 = vmax.f32 %v1737_v7, 0.0  ;;  %v1506_v11 = vadd.f32 %v2536_v10, %v3382_v28  ;;  %v1500_v12 = vpop.f32.mrb[55].mxu1 }
 0x1df   :  { %v1800_v27 = vmax.f32 %v1736_v9, 0.0  ;;  %v1501_v13 = vadd.f32 %v1500_v12, %v3384_v29 }
 0x1e0   :  { %1865 = vst.msk [vmem:[%s3757_s6 + $0xa8] sm:$0xff] %vm1131_vm2, %v1801_v26  ;;  %v1739_v14 = vadd.f32 %v3405_v39, %v1506_v11 }
 0x1e1   :  { %1864 = vst.msk [vmem:[%s3757_s6 + $0xa0] sm:$0xff] %vm1131_vm2, %v1800_v27  ;;  %v1738_v38 = vadd.f32 %v3405_v39, %v1501_v13  ;;  %v2539_v40 = vpop.f32.mrb[56].mxu1 }
 0x1e2   :  { %v1803_v28 = vmax.f32 %v1739_v14, 0.0  ;;  %v1516_v1 = vadd.f32 %v2539_v40, %v3386_v30  ;;  %v1510_v41 = vpop.f32.mrb[57].mxu1 }
 0x1e3   :  { %v1802_v29 = vmax.f32 %v1738_v38, 0.0  ;;  %v1511_v42 = vadd.f32 %v1510_v41, %v3388_v31 }
 0x1e4   :  { %1867 = vst.msk [vmem:[%s3757_s6 + $0xb8] sm:$0xff] %vm1131_vm2, %v1803_v28  ;;  %v1741_v43 = vadd.f32 %v3405_v39, %v1516_v1 }
 0x1e5   :  { %1866 = vst.msk [vmem:[%s3757_s6 + $0xb0] sm:$0xff] %vm1131_vm2, %v1802_v29  ;;  %v1740_v44 = vadd.f32 %v3405_v39, %v1511_v42  ;;  %v2542_v16 = vpop.f32.mrb[58].mxu1 }
 0x1e6   :  { %v1805_v30 = vmax.f32 %v1741_v43, 0.0  ;;  %v1526_v45 = vadd.f32 %v2542_v16, %v3390_v32  ;;  %v1520_v46 = vpop.f32.mrb[59].mxu1 }
 0x1e7   :  { %v1804_v31 = vmax.f32 %v1740_v44, 0.0  ;;  %v1521_v17 = vadd.f32 %v1520_v46, %v3392_v33 }
 0x1e8   :  { %1869 = vst.msk [vmem:[%s3757_s6 + $0xc8] sm:$0xff] %vm1131_vm2, %v1805_v30  ;;  %v1743_v47 = vadd.f32 %v3405_v39, %v1526_v45 }
 0x1e9   :  { %1868 = vst.msk [vmem:[%s3757_s6 + $0xc0] sm:$0xff] %vm1131_vm2, %v1804_v31  ;;  %v1742_v48 = vadd.f32 %v3405_v39, %v1521_v17  ;;  %v2545_v49 = vpop.f32.mrb[60].mxu1 }
 0x1ea   :  { %v1807_v32 = vmax.f32 %v1743_v47, 0.0  ;;  %v1536_v50 = vadd.f32 %v2545_v49, %v3394_v34  ;;  %v1530_v18 = vpop.f32.mrb[61].mxu1 }
 0x1eb   :  { %v1806_v33 = vmax.f32 %v1742_v48, 0.0  ;;  %v1531_v51 = vadd.f32 %v1530_v18, %v3396_v35 }
 0x1ec   :  { %1871 = vst.msk [vmem:[%s3757_s6 + $0xd8] sm:$0xff] %vm1131_vm2, %v1807_v32  ;;  %v1745_v52 = vadd.f32 %v3405_v39, %v1536_v50 }
 0x1ed   :  { %1870 = vst.msk [vmem:[%s3757_s6 + $0xd0] sm:$0xff] %vm1131_vm2, %v1806_v33  ;;  %v1744_v19 = vadd.f32 %v3405_v39, %v1531_v51  ;;  %v2548_v53 = vpop.f32.mrb[62].mxu1 }
 0x1ee   :  { %v1809_v34 = vmax.f32 %v1745_v52, 0.0  ;;  %v1546_v54 = vadd.f32 %v2548_v53, %v3398_v36  ;;  %v1540_v55 = vpop.f32.mrb[63].mxu1 }
 0x1ef   :  { %v1808_v35 = vmax.f32 %v1744_v19, 0.0  ;;  %v1541_v56 = vadd.f32 %v1540_v55, %v3400_v37 }
 0x1f0   :  { %1873 = vst.msk [vmem:[%s3757_s6 + $0xe8] sm:$0xff] %vm1131_vm2, %v1809_v34  ;;  %v1747_v20 = vadd.f32 %v3405_v39, %v1546_v54 }
 0x1f1   :  { %1872 = vst.msk [vmem:[%s3757_s6 + $0xe0] sm:$0xff] %vm1131_vm2, %v1808_v35  ;;  %v1746_v57 = vadd.f32 %v3405_v39, %v1541_v56  ;;  %v2551_v58 = vpop.f32.mrb[0].mxu1 }
 0x1f2   :  { %v1811_v36 = vmax.f32 %v1747_v20, 0.0  ;;  %v1749_v21 = vadd.f32 %v2551_v58, %v3405_v39  ;;  %v1550_v59 = vpop.f32.mrb[1].mxu1 }
 0x1f3   :  { %v1810_v37 = vmax.f32 %v1746_v57, 0.0  ;;  %v1748_v60 = vadd.f32 %v3405_v39, %v1550_v59 }
 0x1f4   :  { %1875 = vst.msk [vmem:[%s3757_s6 + $0xf8] sm:$0xff] %vm1131_vm2, %v1811_v36  ;;  %v1813_v61 = vmax.f32 %v1749_v21, 0.0 }
 0x1f5   :  { %1874 = vst.msk [vmem:[%s3757_s6 + $0xf0] sm:$0xff] %vm1131_vm2, %v1810_v37  ;;  %v1812_v62 = vmax.f32 %v1748_v60, 0.0  ;;  %v2554_v22 = vpop.f32.mrb[2].mxu1 }
 0x1f6   :  { %1877 = vst.msk [vmem:[%s3757_s6 + $0x108] sm:$0xff] %vm1131_vm2, %v1813_v61  ;;  %v1751_v63 = vadd.f32 %v2554_v22, %v3405_v39  ;;  %v1560_v0 = vpop.f32.mrb[3].mxu1 }
 0x1f7   :  { %1876 = vst.msk [vmem:[%s3757_s6 + $0x100] sm:$0xff] %vm1131_vm2, %v1812_v62  ;;  %v1750_v23 = vadd.f32 %v3405_v39, %v1560_v0 }
 0x1f8   :  { %v1815_v8 = vmax.f32 %v1751_v63, 0.0 }
 0x1f9   :  { %v1814_v15 = vmax.f32 %v1750_v23, 0.0  ;;  %v2557_v2 = vpop.f32.mrb[4].mxu1 }
 0x1fa   :  { %1879 = vst.msk [vmem:[%s3757_s6 + $0x118] sm:$0xff] %vm1131_vm2, %v1815_v8  ;;  %v1753_v3 = vadd.f32 %v2557_v2, %v3405_v39  ;;  %v1570_v24 = vpop.f32.mrb[5].mxu1 }
 0x1fb   :  { %1878 = vst.msk [vmem:[%s3757_s6 + $0x110] sm:$0xff] %vm1131_vm2, %v1814_v15  ;;  %v1752_v4 = vadd.f32 %v3405_v39, %v1570_v24 }
 0x1fc   :  { %v1817_v5 = vmax.f32 %v1753_v3, 0.0 }
 0x1fd   :  { %v1816_v25 = vmax.f32 %v1752_v4, 0.0  ;;  %v2560_v6 = vpop.f32.mrb[6].mxu1 }
 0x1fe   :  { %1881 = vst.msk [vmem:[%s3757_s6 + $0x128] sm:$0xff] %vm1131_vm2, %v1817_v5  ;;  %v1755_v7 = vadd.f32 %v2560_v6, %v3405_v39  ;;  %v1580_v9 = vpop.f32.mrb[7].mxu1 }
 0x1ff   :  { %1880 = vst.msk [vmem:[%s3757_s6 + $0x120] sm:$0xff] %vm1131_vm2, %v1816_v25  ;;  %v1754_v10 = vadd.f32 %v3405_v39, %v1580_v9 }
 0x200   :  { %v1819_v26 = vmax.f32 %v1755_v7, 0.0 }
 0x201   :  { %v1818_v11 = vmax.f32 %v1754_v10, 0.0  ;;  %v2563_v12 = vpop.f32.mrb[8].mxu1 }
 0x202   :  { %1883 = vst.msk [vmem:[%s3757_s6 + $0x138] sm:$0xff] %vm1131_vm2, %v1819_v26  ;;  %v1757_v27 = vadd.f32 %v2563_v12, %v3405_v39  ;;  %v1590_v13 = vpop.f32.mrb[9].mxu1 }
 0x203   :  { %1882 = vst.msk [vmem:[%s3757_s6 + $0x130] sm:$0xff] %vm1131_vm2, %v1818_v11  ;;  %v1756_v14 = vadd.f32 %v3405_v39, %v1590_v13 }
 0x204   :  { %v1821_v38 = vmax.f32 %v1757_v27, 0.0 }
 0x205   :  { %v1820_v40 = vmax.f32 %v1756_v14, 0.0  ;;  %v2566_v28 = vpop.f32.mrb[10].mxu1 }
 0x206   :  { %1885 = vst.msk [vmem:[%s3757_s6 + $0x148] sm:$0xff] %vm1131_vm2, %v1821_v38  ;;  %v1759_v1 = vadd.f32 %v2566_v28, %v3405_v39  ;;  %v1600_v41 = vpop.f32.mrb[11].mxu1 }
 0x207   :  { %1884 = vst.msk [vmem:[%s3757_s6 + $0x140] sm:$0xff] %vm1131_vm2, %v1820_v40  ;;  %v1758_v29 = vadd.f32 %v3405_v39, %v1600_v41 }
 0x208   :  { %v1823_v42 = vmax.f32 %v1759_v1, 0.0 }
 0x209   :  { %v1822_v43 = vmax.f32 %v1758_v29, 0.0  ;;  %v2569_v44 = vpop.f32.mrb[12].mxu1 }
 0x20a   :  { %1887 = vst.msk [vmem:[%s3757_s6 + $0x158] sm:$0xff] %vm1131_vm2, %v1823_v42  ;;  %v1761_v16 = vadd.f32 %v2569_v44, %v3405_v39  ;;  %v1610_v30 = vpop.f32.mrb[13].mxu1 }
 0x20b   :  { %1886 = vst.msk [vmem:[%s3757_s6 + $0x150] sm:$0xff] %vm1131_vm2, %v1822_v43  ;;  %v1760_v45 = vadd.f32 %v3405_v39, %v1610_v30 }
 0x20c   :  { %v1825_v46 = vmax.f32 %v1761_v16, 0.0 }
 0x20d   :  { %v1824_v31 = vmax.f32 %v1760_v45, 0.0  ;;  %v2572_v17 = vpop.f32.mrb[14].mxu1 }
 0x20e   :  { %1889 = vst.msk [vmem:[%s3757_s6 + $0x168] sm:$0xff] %vm1131_vm2, %v1825_v46  ;;  %v1763_v47 = vadd.f32 %v2572_v17, %v3405_v39  ;;  %v1620_v48 = vpop.f32.mrb[15].mxu1 }
 0x20f   :  { %1888 = vst.msk [vmem:[%s3757_s6 + $0x160] sm:$0xff] %vm1131_vm2, %v1824_v31  ;;  %v1762_v49 = vadd.f32 %v3405_v39, %v1620_v48 }
 0x210   :  { %v1827_v32 = vmax.f32 %v1763_v47, 0.0 }
 0x211   :  { %v1826_v50 = vmax.f32 %v1762_v49, 0.0  ;;  %v2575_v18 = vpop.f32.mrb[16].mxu1 }
 0x212   :  { %1891 = vst.msk [vmem:[%s3757_s6 + $0x178] sm:$0xff] %vm1131_vm2, %v1827_v32  ;;  %v1765_v33 = vadd.f32 %v2575_v18, %v3405_v39  ;;  %v1630_v51 = vpop.f32.mrb[17].mxu1 }
 0x213   :  { %1890 = vst.msk [vmem:[%s3757_s6 + $0x170] sm:$0xff] %vm1131_vm2, %v1826_v50  ;;  %v1764_v52 = vadd.f32 %v3405_v39, %v1630_v51 }
 0x214   :  { %v1829_v19 = vmax.f32 %v1765_v33, 0.0 }
 0x215   :  { %v1828_v53 = vmax.f32 %v1764_v52, 0.0  ;;  %v2578_v34 = vpop.f32.mrb[18].mxu1 }
 0x216   :  { %1893 = vst.msk [vmem:[%s3757_s6 + $0x188] sm:$0xff] %vm1131_vm2, %v1829_v19  ;;  %v1767_v54 = vadd.f32 %v2578_v34, %v3405_v39  ;;  %v1640_v55 = vpop.f32.mrb[19].mxu1 }
 0x217   :  { %1892 = vst.msk [vmem:[%s3757_s6 + $0x180] sm:$0xff] %vm1131_vm2, %v1828_v53  ;;  %v1766_v35 = vadd.f32 %v3405_v39, %v1640_v55 }
 0x218   :  { %v1831_v56 = vmax.f32 %v1767_v54, 0.0 }
 0x219   :  { %v1830_v20 = vmax.f32 %v1766_v35, 0.0  ;;  %v2581_v57 = vpop.f32.mrb[20].mxu1 }
 0x21a   :  { %1895 = vst.msk [vmem:[%s3757_s6 + $0x198] sm:$0xff] %vm1131_vm2, %v1831_v56  ;;  %v1769_v58 = vadd.f32 %v2581_v57, %v3405_v39  ;;  %v1650_v36 = vpop.f32.mrb[21].mxu1 }
 0x21b   :  { %1894 = vst.msk [vmem:[%s3757_s6 + $0x190] sm:$0xff] %vm1131_vm2, %v1830_v20  ;;  %v1768_v21 = vadd.f32 %v3405_v39, %v1650_v36 }
 0x21c   :  { %v1833_v59 = vmax.f32 %v1769_v58, 0.0 }
 0x21d   :  { %v1832_v37 = vmax.f32 %v1768_v21, 0.0  ;;  %v2584_v60 = vpop.f32.mrb[22].mxu1 }
 0x21e   :  { %1897 = vst.msk [vmem:[%s3757_s6 + $0x1a8] sm:$0xff] %vm1131_vm2, %v1833_v59  ;;  %v1771_v61 = vadd.f32 %v2584_v60, %v3405_v39  ;;  %v1660_v62 = vpop.f32.mrb[23].mxu1 }
 0x21f   :  { %1896 = vst.msk [vmem:[%s3757_s6 + $0x1a0] sm:$0xff] %vm1131_vm2, %v1832_v37  ;;  %v1770_v22 = vadd.f32 %v3405_v39, %v1660_v62 }
 0x220   :  { %v1835_v63 = vmax.f32 %v1771_v61, 0.0 }
 0x221   :  { %v1834_v0 = vmax.f32 %v1770_v22, 0.0  ;;  %v2587_v23 = vpop.f32.mrb[24].mxu1 }
 0x222   :  { %1899 = vst.msk [vmem:[%s3757_s6 + $0x1b8] sm:$0xff] %vm1131_vm2, %v1835_v63  ;;  %v1773_v8 = vadd.f32 %v2587_v23, %v3405_v39  ;;  %v1670_v15 = vpop.f32.mrb[25].mxu1 }
 0x223   :  { %1898 = vst.msk [vmem:[%s3757_s6 + $0x1b0] sm:$0xff] %vm1131_vm2, %v1834_v0  ;;  %v1772_v2 = vadd.f32 %v3405_v39, %v1670_v15 }
 0x224   :  { %v1837_v3 = vmax.f32 %v1773_v8, 0.0 }
 0x225   :  { %v1836_v24 = vmax.f32 %v1772_v2, 0.0  ;;  %v2590_v4 = vpop.f32.mrb[26].mxu1 }
 0x226   :  { %1901 = vst.msk [vmem:[%s3757_s6 + $0x1c8] sm:$0xff] %vm1131_vm2, %v1837_v3  ;;  %v1775_v5 = vadd.f32 %v2590_v4, %v3405_v39  ;;  %v1680_v25 = vpop.f32.mrb[27].mxu1 }
 0x227   :  { %1900 = vst.msk [vmem:[%s3757_s6 + $0x1c0] sm:$0xff] %vm1131_vm2, %v1836_v24  ;;  %v1774_v6 = vadd.f32 %v3405_v39, %v1680_v25 }
 0x228   :  { %v1839_v7 = vmax.f32 %v1775_v5, 0.0 }
 0x229   :  { %v1838_v9 = vmax.f32 %v1774_v6, 0.0  ;;  %v2593_v10 = vpop.f32.mrb[28].mxu1 }
 0x22a   :  { %1903 = vst.msk [vmem:[%s3757_s6 + $0x1d8] sm:$0xff] %vm1131_vm2, %v1839_v7  ;;  %v1777_v26 = vadd.f32 %v2593_v10, %v3405_v39  ;;  %v1690_v11 = vpop.f32.mrb[29].mxu1 }
 0x22b   :  { %1902 = vst.msk [vmem:[%s3757_s6 + $0x1d0] sm:$0xff] %vm1131_vm2, %v1838_v9  ;;  %v1776_v12 = vadd.f32 %v3405_v39, %v1690_v11 }
 0x22c   :  { %v1841_v27 = vmax.f32 %v1777_v26, 0.0 }
 0x22d   :  { %v1840_v13 = vmax.f32 %v1776_v12, 0.0  ;;  %v2596_v14 = vpop.f32.mrb[30].mxu1 }
 0x22e   :  { %1905 = vst.msk [vmem:[%s3757_s6 + $0x1e8] sm:$0xff] %vm1131_vm2, %v1841_v27  ;;  %v1779_v38 = vadd.f32 %v2596_v14, %v3405_v39  ;;  %v1700_v40 = vpop.f32.mrb[31].mxu1 }
 0x22f   :  { %1904 = vst.msk [vmem:[%s3757_s6 + $0x1e0] sm:$0xff] %vm1131_vm2, %v1840_v13  ;;  %v1778_v28 = vadd.f32 %v3405_v39, %v1700_v40 }
 0x230   :  { %v1843_v1 = vmax.f32 %v1779_v38, 0.0 }
 0x231   :  { %v1842_v41 = vmax.f32 %v1778_v28, 0.0 }
 0x232   :  { %1907 = vst.msk [vmem:[%s3757_s6 + $0x1f8] sm:$0xff] %vm1131_vm2, %v1843_v1 }
 0x233   :  { %1906 = vst.msk [vmem:[%s3757_s6 + $0x1f0] sm:$0xff] %vm1131_vm2, %v1842_v41 }

</bundles_post_ra>
